<compile_context>
chip_gen: v5e
topology: v5e:2x2
jax: 0.10.0
libtpu: 0.0.40
codegen_flags: <defaults>
</compile_context>

<pallas_src>
import functools
import math

import jax
import jax.numpy as jnp
from jax.experimental import pallas as pl
from jax.experimental.pallas import tpu as pltpu


NEG_INF = -1e9  # finite "masked" additive bias (avoids NaN on degenerate rows)


# ------------------------------ in-kernel helpers ------------------------------

def _layernorm(x, g, b, eps=1e-5):
    # matches nn.LayerNorm: biased variance, eps inside rsqrt; f32 math
    mu = jnp.mean(x, axis=-1, keepdims=True)
    var = jnp.mean((x - mu) ** 2, axis=-1, keepdims=True)
    return (x - mu) * jax.lax.rsqrt(var + eps) * g + b


# --------------------------- fused transformer kernel ---------------------------

def transformer_kernel(n_heads,
                       x_ref, pad_ref,
                       wq_ref, wk_ref, wv_ref, wo_ref, w1_ref, w2_ref,
                       bq_ref, bk_ref, bv_ref, bo_ref, b1_ref, b2_ref,
                       ln1g_ref, ln1b_ref, ln2g_ref, ln2b_ref,
                       wlm_ref,
                       logits_ref,
                       h_ref):
    l = pl.program_id(1)                 # layer index (inner, "arbitrary")
    n_layers = pl.num_programs(1)
    T, C = h_ref.shape
    H = n_heads
    D = C // H
    scale = 1.0 / math.sqrt(D)

    # load embeddings into the resident residual-stream scratch at layer 0
    @pl.when(l == 0)
    def _():
        h_ref[...] = x_ref[0]

    x = h_ref[...]                       # (T, C) f32 residual stream
    xb = x.astype(jnp.bfloat16)

    # ---------------- multi-head self-attention (post-LN residual) ----------------
    # three lane-dense (C,C) projections, bf16 operands / f32 accumulation
    q = jnp.dot(xb, wq_ref[0], preferred_element_type=jnp.float32) + bq_ref[0]
    k = jnp.dot(xb, wk_ref[0], preferred_element_type=jnp.float32) + bk_ref[0]
    v = jnp.dot(xb, wv_ref[0], preferred_element_type=jnp.float32) + bv_ref[0]

    # split heads onto a leading batch axis: (T, C) -> (H, T, D)
    qh = jnp.stack([q[:, h * D:(h + 1) * D] for h in range(H)], axis=0).astype(jnp.bfloat16)
    kh = jnp.stack([k[:, h * D:(h + 1) * D] for h in range(H)], axis=0).astype(jnp.bfloat16)
    vh = jnp.stack([v[:, h * D:(h + 1) * D] for h in range(H)], axis=0).astype(jnp.bfloat16)

    # batched attention scores for all heads at once
    s = jnp.einsum('hqd,hkd->hqk', qh, kh,
                   preferred_element_type=jnp.float32) * scale          # (H, T, T)

    # causal mask (key > query masked) + key-padding mask (per-key bias)
    row = jax.lax.broadcasted_iota(jnp.int32, (T, T), 0)
    col = jax.lax.broadcasted_iota(jnp.int32, (T, T), 1)
    causal = jnp.where(col > row, NEG_INF, 0.0).astype(jnp.float32)     # (T, T)
    s = s + causal[None, :, :] + pad_ref[0]                             # pad: (1, T)

    # numerically-stable softmax; reciprocal on the EUP
    s = s - jnp.max(s, axis=-1, keepdims=True)
    p = jnp.exp(s)
    p = p * pl.reciprocal(jnp.sum(p, axis=-1, keepdims=True), approx=True)

    y = jnp.einsum('hqk,hkd->hqd', p.astype(jnp.bfloat16), vh,
                   preferred_element_type=jnp.float32)                  # (H, T, D)

    # concat heads -> ONE K=C output projection
    y2d = jnp.concatenate([y[h] for h in range(H)], axis=-1)            # (T, C)
    attn = jnp.dot(y2d.astype(jnp.bfloat16), wo_ref[0],
                   preferred_element_type=jnp.float32) + bo_ref[0]

    x = _layernorm(x + attn, ln1g_ref[0], ln1b_ref[0])                  # post-LN

    # ----------------------------- feed-forward (ReLU) -----------------------------
    f = jnp.dot(x.astype(jnp.bfloat16), w1_ref[0],
                preferred_element_type=jnp.float32) + b1_ref[0]
    f = jnp.maximum(f, 0.0)
    ff = jnp.dot(f.astype(jnp.bfloat16), w2_ref[0],
                 preferred_element_type=jnp.float32) + b2_ref[0]
    x = _layernorm(x + ff, ln2g_ref[0], ln2b_ref[0])                    # post-LN

    h_ref[...] = x

    # lm_head fused into the same kernel; logits block stays VMEM-resident
    # across the layer sweep and is written back once per batch tile.
    @pl.when(l == n_layers - 1)
    def _():
        logits_ref[0] = jnp.dot(x.astype(jnp.bfloat16), wlm_ref[...],
                                preferred_element_type=jnp.float32)


# --------------------------------- host wrapper ---------------------------------

def run_transformer(x_emb, pad_bias, stacked, w_lm, cfg):
    B, T, C = x_emb.shape
    L = cfg['num_layers']
    F = cfg['d_ff']
    V = w_lm.shape[1]

    def wspec(shape):
        # per-layer stacked parameter: select layer slice with the inner grid axis
        return pl.BlockSpec((1,) + shape, lambda b, l: (l, 0, 0))

    in_specs = [
        pl.BlockSpec((1, T, C), lambda b, l: (b, 0, 0)),   # embeddings (per batch tile)
        pl.BlockSpec((1, 1, T), lambda b, l: (b, 0, 0)),   # key-padding bias
        wspec((C, C)), wspec((C, C)), wspec((C, C)), wspec((C, C)),   # wq wk wv wo
        wspec((C, F)), wspec((F, C)),                                  # w1 w2
        wspec((1, C)), wspec((1, C)), wspec((1, C)), wspec((1, C)),   # bq bk bv bo
        wspec((1, F)), wspec((1, C)),                                  # b1 b2
        wspec((1, C)), wspec((1, C)), wspec((1, C)), wspec((1, C)),   # ln1g ln1b ln2g ln2b
        pl.BlockSpec((C, V), lambda b, l: (0, 0)),         # lm_head (VMEM-resident)
    ]
    out_spec = pl.BlockSpec((1, T, V), lambda b, l: (b, 0, 0))

    grid_spec = pltpu.PrefetchScalarGridSpec(
        num_scalar_prefetch=0,
        grid=(B, L),                                       # batch (parallel) x layers (arbitrary)
        in_specs=in_specs,
        out_specs=out_spec,
        scratch_shapes=[pltpu.VMEM((T, C), jnp.float32)],  # resident residual stream
    )
    return pl.pallas_call(
        functools.partial(transformer_kernel, cfg['n_heads']),
        out_shape=jax.ShapeDtypeStruct((B, T, V), jnp.float32),
        grid_spec=grid_spec,
        compiler_params=pltpu.CompilerParams(
            dimension_semantics=("parallel", "arbitrary")),
    )(x_emb, pad_bias, *stacked, w_lm)


def stack_block_params(blocks):
    # stack per-layer params along a leading layer axis; matmul weights -> bf16
    def stack(name, dtype):
        return jnp.stack([b[name] for b in blocks]).astype(dtype)
    mm, f32 = jnp.bfloat16, jnp.float32
    return (
        stack('wq', mm), stack('wk', mm), stack('wv', mm), stack('wo', mm),
        stack('w1', mm), stack('w2', mm),
        stack('bq', f32), stack('bk', f32), stack('bv', f32), stack('bo', f32),
        stack('b1', f32), stack('b2', f32),
        stack('ln1_g', f32), stack('ln1_b', f32), stack('ln2_g', f32), stack('ln2_b', f32),
    )


def transformer_forward(tokens, params, cfg):
    B, T = tokens.shape
    assert T <= cfg['max_len']
    # embedding gather (glue, plain JAX)
    x = params['tok_emb'][tokens] + params['pos_emb'][:T][None, :, :]
    x = x.astype(jnp.float32)
    # src_key_padding_mask -> additive per-key bias
    pad_bias = jnp.where(tokens == cfg['pad_id'], NEG_INF, 0.0)
    pad_bias = pad_bias.astype(jnp.float32).reshape(B, 1, T)
    stacked = stack_block_params(params['blocks'])
    w_lm = params['w_lm'].astype(jnp.bfloat16)
    return run_transformer(x, pad_bias, stacked, w_lm, cfg)     # (B, T, vocab)


# ------------------------------ deterministic init ------------------------------

def _xavier(key, shape):
    fan_in, fan_out = shape
    limit = math.sqrt(6.0 / (fan_in + fan_out))
    return jax.random.uniform(key, shape, jnp.float32, -limit, limit)


def init_params(key, cfg):
    V, C, F, P, L = (cfg['vocab_size'], cfg['d_model'], cfg['d_ff'],
                     cfg['max_len'], cfg['num_layers'])
    keys = iter(jax.random.split(key, 8 * L + 8))
    params = {
        'tok_emb': jax.random.normal(next(keys), (V, C), jnp.float32),
        'pos_emb': 0.02 * jax.random.normal(next(keys), (P, C), jnp.float32),
        'blocks': [],
    }
    for _ in range(L):
        params['blocks'].append(dict(
            # linear weights stored [in, out] (transpose of PyTorch convention)
            wq=_xavier(next(keys), (C, C)), bq=jnp.zeros((1, C), jnp.float32),
            wk=_xavier(next(keys), (C, C)), bk=jnp.zeros((1, C), jnp.float32),
            wv=_xavier(next(keys), (C, C)), bv=jnp.zeros((1, C), jnp.float32),
            wo=_xavier(next(keys), (C, C)), bo=jnp.zeros((1, C), jnp.float32),
            w1=_xavier(next(keys), (C, F)), b1=jnp.zeros((1, F), jnp.float32),
            w2=_xavier(next(keys), (F, C)), b2=jnp.zeros((1, C), jnp.float32),
            ln1_g=jnp.ones((1, C), jnp.float32), ln1_b=jnp.zeros((1, C), jnp.float32),
            ln2_g=jnp.ones((1, C), jnp.float32), ln2_b=jnp.zeros((1, C), jnp.float32),
        ))
    params['w_lm'] = _xavier(next(keys), (C, V))    # lm_head, bias-free
    return params


# -------------------------------------- main -------------------------------------

if __name__ == "__main__":
    # small, lane-dense config consistent with AutoregressiveTransformer
    cfg = dict(vocab_size=128, d_model=128, n_heads=4, num_layers=2,
               d_ff=256, max_len=16, pad_id=0)
    B, T = 2, 8

    key = jax.random.PRNGKey(0)
    k_tok, k_par = jax.random.split(key)
    tokens = jax.random.randint(k_tok, (B, T), 1, cfg['vocab_size'], dtype=jnp.int32)
    tokens = tokens.at[:, -1].set(cfg['pad_id'])    # exercise the key-padding mask
    params = init_params(k_par, cfg)

    fwd = jax.jit(functools.partial(transformer_forward, cfg=cfg))
    logits = fwd(tokens, params)
    jax.block_until_ready(logits)

    assert logits.shape == (B, T, cfg['vocab_size'])
    assert bool(jnp.all(jnp.isfinite(logits)))
    print("KERNEL_OK")
</pallas_src>

<mosaic_0001>
module attributes {stable_mosaic.version = 11 : i64} {
  func.func @transformer_kernel(%arg0: i32, %arg1: i32, %arg2: memref<1x8x128xf32, #tpu.memory_space<vmem>>, %arg3: memref<1x1x8xf32, #tpu.memory_space<vmem>>, %arg4: memref<1x128x128xbf16, #tpu.memory_space<vmem>>, %arg5: memref<1x128x128xbf16, #tpu.memory_space<vmem>>, %arg6: memref<1x128x128xbf16, #tpu.memory_space<vmem>>, %arg7: memref<1x128x128xbf16, #tpu.memory_space<vmem>>, %arg8: memref<1x128x256xbf16, #tpu.memory_space<vmem>>, %arg9: memref<1x256x128xbf16, #tpu.memory_space<vmem>>, %arg10: memref<1x1x128xf32, #tpu.memory_space<vmem>>, %arg11: memref<1x1x128xf32, #tpu.memory_space<vmem>>, %arg12: memref<1x1x128xf32, #tpu.memory_space<vmem>>, %arg13: memref<1x1x128xf32, #tpu.memory_space<vmem>>, %arg14: memref<1x1x256xf32, #tpu.memory_space<vmem>>, %arg15: memref<1x1x128xf32, #tpu.memory_space<vmem>>, %arg16: memref<1x1x128xf32, #tpu.memory_space<vmem>>, %arg17: memref<1x1x128xf32, #tpu.memory_space<vmem>>, %arg18: memref<1x1x128xf32, #tpu.memory_space<vmem>>, %arg19: memref<1x1x128xf32, #tpu.memory_space<vmem>>, %arg20: memref<128x128xbf16, #tpu.memory_space<vmem>>, %arg21: memref<1x8x128xf32, #tpu.memory_space<vmem>>, %arg22: memref<8x128xf32, #tpu.memory_space<vmem>>) attributes {dimension_semantics = [#tpu.dimension_semantics<parallel>, #tpu.dimension_semantics<arbitrary>], iteration_bounds = array<i64: 2, 2>, scalar_prefetch = 0 : i64, scratch_operands = 1 : i64, tpu.core_type = #tpu.core_type<tc>, window_params = [{transform_indices = @transform_0, window_bounds = array<i64: 1, 8, 128>}, {transform_indices = @transform_1, window_bounds = array<i64: 1, 1, 8>}, {transform_indices = @transform_2, window_bounds = array<i64: 1, 128, 128>}, {transform_indices = @transform_3, window_bounds = array<i64: 1, 128, 128>}, {transform_indices = @transform_4, window_bounds = array<i64: 1, 128, 128>}, {transform_indices = @transform_5, window_bounds = array<i64: 1, 128, 128>}, {transform_indices = @transform_6, window_bounds = array<i64: 1, 128, 256>}, {transform_indices = @transform_7, window_bounds = array<i64: 1, 256, 128>}, {transform_indices = @transform_8, window_bounds = array<i64: 1, 1, 128>}, {transform_indices = @transform_9, window_bounds = array<i64: 1, 1, 128>}, {transform_indices = @transform_10, window_bounds = array<i64: 1, 1, 128>}, {transform_indices = @transform_11, window_bounds = array<i64: 1, 1, 128>}, {transform_indices = @transform_12, window_bounds = array<i64: 1, 1, 256>}, {transform_indices = @transform_13, window_bounds = array<i64: 1, 1, 128>}, {transform_indices = @transform_14, window_bounds = array<i64: 1, 1, 128>}, {transform_indices = @transform_15, window_bounds = array<i64: 1, 1, 128>}, {transform_indices = @transform_16, window_bounds = array<i64: 1, 1, 128>}, {transform_indices = @transform_17, window_bounds = array<i64: 1, 1, 128>}, {pipeline_mode = #tpu.pipeline_mode<synchronous>, transform_indices = @transform_18, window_bounds = array<i64: 128, 128>}, {transform_indices = @transform_19, window_bounds = array<i64: 1, 8, 128>}]} {
    %c0_i32 = arith.constant 0 : i32
    %0 = arith.cmpi eq, %arg1, %c0_i32 : i32
    %1 = arith.extui %0 : i1 to i32
    %c0_i32_0 = arith.constant 0 : i32
    %2 = arith.cmpi ne, %1, %c0_i32_0 : i32
    scf.if %2 {
      %c0_79 = arith.constant 0 : index
      %c0_80 = arith.constant 0 : index
      %c0_81 = arith.constant 0 : index
      %178 = vector.load %arg2[%c0_79, %c0_80, %c0_81] : memref<1x8x128xf32, #tpu.memory_space<vmem>>, vector<1x8x128xf32>
      %179 = vector.shape_cast %178 : vector<1x8x128xf32> to vector<8x128xf32>
      %c0_82 = arith.constant 0 : index
      %c0_83 = arith.constant 0 : index
      %180 = vector.load %arg22[%c0_82, %c0_83] : memref<8x128xf32, #tpu.memory_space<vmem>>, vector<8x128xf32>
      tpu.vector_store %arg22[%c0_82, %c0_83], %179 {strides = array<i32>} : memref<8x128xf32, #tpu.memory_space<vmem>>, vector<8x128xf32>,
    } else {
    }
    %c0 = arith.constant 0 : index
    %c0_1 = arith.constant 0 : index
    %3 = vector.load %arg22[%c0, %c0_1] : memref<8x128xf32, #tpu.memory_space<vmem>>, vector<8x128xf32>
    %4 = arith.truncf %3 : vector<8x128xf32> to vector<8x128xbf16>
    %c0_2 = arith.constant 0 : index
    %c0_3 = arith.constant 0 : index
    %c0_4 = arith.constant 0 : index
    %5 = vector.load %arg4[%c0_2, %c0_3, %c0_4] : memref<1x128x128xbf16, #tpu.memory_space<vmem>>, vector<1x128x128xbf16>
    %6 = vector.shape_cast %5 : vector<1x128x128xbf16> to vector<128x128xbf16>
    %cst = arith.constant dense<0.000000e+00> : vector<8x128xf32>
    %7 = tpu.matmul %4, %6, %cst {dimension_numbers = #tpu.dot_dimension_numbers<[1], [0], [0], [1], [0, 0, 1, 1], [], []>} : vector<8x128xbf16>, vector<128x128xbf16>, vector<8x128xf32> -> vector<8x128xf32>
    %c0_5 = arith.constant 0 : index
    %c0_6 = arith.constant 0 : index
    %c0_7 = arith.constant 0 : index
    %8 = vector.load %arg10[%c0_5, %c0_6, %c0_7] : memref<1x1x128xf32, #tpu.memory_space<vmem>>, vector<1x1x128xf32>
    %9 = vector.shape_cast %8 : vector<1x1x128xf32> to vector<1x128xf32>
    %10 = vector.broadcast %9 : vector<1x128xf32> to vector<8x128xf32>
    %11 = arith.addf %7, %10 : vector<8x128xf32>
    %c0_8 = arith.constant 0 : index
    %c0_9 = arith.constant 0 : index
    %c0_10 = arith.constant 0 : index
    %12 = vector.load %arg5[%c0_8, %c0_9, %c0_10] : memref<1x128x128xbf16, #tpu.memory_space<vmem>>, vector<1x128x128xbf16>
    %13 = vector.shape_cast %12 : vector<1x128x128xbf16> to vector<128x128xbf16>
    %cst_11 = arith.constant dense<0.000000e+00> : vector<8x128xf32>
    %14 = tpu.matmul %4, %13, %cst_11 {dimension_numbers = #tpu.dot_dimension_numbers<[1], [0], [0], [1], [0, 0, 1, 1], [], []>} : vector<8x128xbf16>, vector<128x128xbf16>, vector<8x128xf32> -> vector<8x128xf32>
    %c0_12 = arith.constant 0 : index
    %c0_13 = arith.constant 0 : index
    %c0_14 = arith.constant 0 : index
    %15 = vector.load %arg11[%c0_12, %c0_13, %c0_14] : memref<1x1x128xf32, #tpu.memory_space<vmem>>, vector<1x1x128xf32>
    %16 = vector.shape_cast %15 : vector<1x1x128xf32> to vector<1x128xf32>
    %17 = vector.broadcast %16 : vector<1x128xf32> to vector<8x128xf32>
    %18 = arith.addf %14, %17 : vector<8x128xf32>
    %c0_15 = arith.constant 0 : index
    %c0_16 = arith.constant 0 : index
    %c0_17 = arith.constant 0 : index
    %19 = vector.load %arg6[%c0_15, %c0_16, %c0_17] : memref<1x128x128xbf16, #tpu.memory_space<vmem>>, vector<1x128x128xbf16>
    %20 = vector.shape_cast %19 : vector<1x128x128xbf16> to vector<128x128xbf16>
    %cst_18 = arith.constant dense<0.000000e+00> : vector<8x128xf32>
    %21 = tpu.matmul %4, %20, %cst_18 {dimension_numbers = #tpu.dot_dimension_numbers<[1], [0], [0], [1], [0, 0, 1, 1], [], []>} : vector<8x128xbf16>, vector<128x128xbf16>, vector<8x128xf32> -> vector<8x128xf32>
    %c0_19 = arith.constant 0 : index
    %c0_20 = arith.constant 0 : index
    %c0_21 = arith.constant 0 : index
    %22 = vector.load %arg12[%c0_19, %c0_20, %c0_21] : memref<1x1x128xf32, #tpu.memory_space<vmem>>, vector<1x1x128xf32>
    %23 = vector.shape_cast %22 : vector<1x1x128xf32> to vector<1x128xf32>
    %24 = vector.broadcast %23 : vector<1x128xf32> to vector<8x128xf32>
    %25 = arith.addf %21, %24 : vector<8x128xf32>
    %26 = vector.extract_strided_slice %11 {offsets = [0, 0], sizes = [8, 32], strides = [1, 1]} : vector<8x128xf32> to vector<8x32xf32>
    %27 = vector.extract_strided_slice %11 {offsets = [0, 32], sizes = [8, 32], strides = [1, 1]} : vector<8x128xf32> to vector<8x32xf32>
    %28 = vector.extract_strided_slice %11 {offsets = [0, 64], sizes = [8, 32], strides = [1, 1]} : vector<8x128xf32> to vector<8x32xf32>
    %29 = vector.extract_strided_slice %11 {offsets = [0, 96], sizes = [8, 32], strides = [1, 1]} : vector<8x128xf32> to vector<8x32xf32>
    %30 = vector.shape_cast %26 : vector<8x32xf32> to vector<1x8x32xf32>
    %31 = vector.shape_cast %27 : vector<8x32xf32> to vector<1x8x32xf32>
    %32 = vector.shape_cast %28 : vector<8x32xf32> to vector<1x8x32xf32>
    %33 = vector.shape_cast %29 : vector<8x32xf32> to vector<1x8x32xf32>
    %34 = tpu.concatenate %30, %31, %32, %33 in 0 : vector<1x8x32xf32>, vector<1x8x32xf32>, vector<1x8x32xf32>, vector<1x8x32xf32> -> vector<4x8x32xf32>
    %35 = arith.truncf %34 : vector<4x8x32xf32> to vector<4x8x32xbf16>
    %36 = vector.extract_strided_slice %18 {offsets = [0, 0], sizes = [8, 32], strides = [1, 1]} : vector<8x128xf32> to vector<8x32xf32>
    %37 = vector.extract_strided_slice %18 {offsets = [0, 32], sizes = [8, 32], strides = [1, 1]} : vector<8x128xf32> to vector<8x32xf32>
    %38 = vector.extract_strided_slice %18 {offsets = [0, 64], sizes = [8, 32], strides = [1, 1]} : vector<8x128xf32> to vector<8x32xf32>
    %39 = vector.extract_strided_slice %18 {offsets = [0, 96], sizes = [8, 32], strides = [1, 1]} : vector<8x128xf32> to vector<8x32xf32>
    %40 = vector.shape_cast %36 : vector<8x32xf32> to vector<1x8x32xf32>
    %41 = vector.shape_cast %37 : vector<8x32xf32> to vector<1x8x32xf32>
    %42 = vector.shape_cast %38 : vector<8x32xf32> to vector<1x8x32xf32>
    %43 = vector.shape_cast %39 : vector<8x32xf32> to vector<1x8x32xf32>
    %44 = tpu.concatenate %40, %41, %42, %43 in 0 : vector<1x8x32xf32>, vector<1x8x32xf32>, vector<1x8x32xf32>, vector<1x8x32xf32> -> vector<4x8x32xf32>
    %45 = arith.truncf %44 : vector<4x8x32xf32> to vector<4x8x32xbf16>
    %46 = vector.extract_strided_slice %25 {offsets = [0, 0], sizes = [8, 32], strides = [1, 1]} : vector<8x128xf32> to vector<8x32xf32>
    %47 = vector.extract_strided_slice %25 {offsets = [0, 32], sizes = [8, 32], strides = [1, 1]} : vector<8x128xf32> to vector<8x32xf32>
    %48 = vector.extract_strided_slice %25 {offsets = [0, 64], sizes = [8, 32], strides = [1, 1]} : vector<8x128xf32> to vector<8x32xf32>
    %49 = vector.extract_strided_slice %25 {offsets = [0, 96], sizes = [8, 32], strides = [1, 1]} : vector<8x128xf32> to vector<8x32xf32>
    %50 = vector.shape_cast %46 : vector<8x32xf32> to vector<1x8x32xf32>
    %51 = vector.shape_cast %47 : vector<8x32xf32> to vector<1x8x32xf32>
    %52 = vector.shape_cast %48 : vector<8x32xf32> to vector<1x8x32xf32>
    %53 = vector.shape_cast %49 : vector<8x32xf32> to vector<1x8x32xf32>
    %54 = tpu.concatenate %50, %51, %52, %53 in 0 : vector<1x8x32xf32>, vector<1x8x32xf32>, vector<1x8x32xf32>, vector<1x8x32xf32> -> vector<4x8x32xf32>
    %55 = arith.truncf %54 : vector<4x8x32xf32> to vector<4x8x32xbf16>
    "tpu.trace_start"() <{level = 10 : i32, message = "hqd,hkd->hqk"}> : () -> ()
    %cst_22 = arith.constant dense<0.000000e+00> : vector<4x8x8xf32>
    %56 = tpu.matmul %35, %45, %cst_22 {dimension_numbers = #tpu.dot_dimension_numbers<[2], [2], [1], [1], [0, 0, 0, 1, 1, 1], [0], [0]>} : vector<4x8x32xbf16>, vector<4x8x32xbf16>, vector<4x8x8xf32> -> vector<4x8x8xf32>
    "tpu.trace_stop"() : () -> ()
    %cst_23 = arith.constant 0.176776692 : f32
    %57 = vector.broadcast %cst_23 : f32 to vector<4x8x8xf32>
    %58 = arith.mulf %56, %57 : vector<4x8x8xf32>
    %59 = tpu.iota {dimensions = array<i32: 0>} : vector<8x8xi32>
    %60 = tpu.iota {dimensions = array<i32: 1>} : vector<8x8xi32>
    %61 = arith.cmpi sgt, %60, %59 : vector<8x8xi32>
    %cst_24 = arith.constant -1.000000e+09 : f32
    %cst_25 = arith.constant 0.000000e+00 : f32
    %62 = vector.broadcast %cst_24 : f32 to vector<8x8xf32>
    %63 = vector.broadcast %cst_25 : f32 to vector<8x8xf32>
    %64 = arith.select %61, %62, %63 : vector<8x8xi1>, vector<8x8xf32>
    %65 = vector.shape_cast %64 : vector<8x8xf32> to vector<1x8x8xf32>
    %66 = vector.broadcast %65 : vector<1x8x8xf32> to vector<4x8x8xf32>
    %67 = arith.addf %58, %66 : vector<4x8x8xf32>
    %c0_26 = arith.constant 0 : index
    %c0_27 = arith.constant 0 : index
    %c0_28 = arith.constant 0 : index
    %68 = vector.load %arg3[%c0_26, %c0_27, %c0_28] : memref<1x1x8xf32, #tpu.memory_space<vmem>>, vector<1x1x8xf32>
    %69 = vector.shape_cast %68 : vector<1x1x8xf32> to vector<1x8xf32>
    %70 = vector.shape_cast %69 : vector<1x8xf32> to vector<1x1x8xf32>
    %71 = vector.broadcast %70 : vector<1x1x8xf32> to vector<4x8x8xf32>
    %72 = arith.addf %67, %71 : vector<4x8x8xf32>
    %cst_29 = arith.constant dense<0xFF800000> : vector<4x8xf32>
    %73 = vector.multi_reduction <maximumf>, %72, %cst_29 [2] : vector<4x8x8xf32> to vector<4x8xf32>
    %74 = vector.shape_cast %73 : vector<4x8xf32> to vector<4x8x1xf32>
    %75 = vector.broadcast %74 : vector<4x8x1xf32> to vector<4x8x8xf32>
    %76 = arith.subf %72, %75 : vector<4x8x8xf32>
    %77 = math.exp %76 : vector<4x8x8xf32>
    %cst_30 = arith.constant dense<0.000000e+00> : vector<4x8xf32>
    %78 = vector.multi_reduction <add>, %77, %cst_30 [2] : vector<4x8x8xf32> to vector<4x8xf32>
    %79 = vector.shape_cast %78 : vector<4x8xf32> to vector<4x8x1xf32>
    %80 = tpu.reciprocal %79 {approx = true} : vector<4x8x1xf32> -> vector<4x8x1xf32>
    %81 = vector.broadcast %80 : vector<4x8x1xf32> to vector<4x8x8xf32>
    %82 = arith.mulf %77, %81 : vector<4x8x8xf32>
    %83 = arith.truncf %82 : vector<4x8x8xf32> to vector<4x8x8xbf16>
    "tpu.trace_start"() <{level = 10 : i32, message = "hqk,hkd->hqd"}> : () -> ()
    %cst_31 = arith.constant dense<0.000000e+00> : vector<4x8x32xf32>
    %84 = tpu.matmul %83, %55, %cst_31 {dimension_numbers = #tpu.dot_dimension_numbers<[2], [1], [1], [2], [0, 0, 0, 1, 1, 2], [0], [0]>} : vector<4x8x8xbf16>, vector<4x8x32xbf16>, vector<4x8x32xf32> -> vector<4x8x32xf32>
    "tpu.trace_stop"() : () -> ()
    %85 = vector.extract_strided_slice %84 {offsets = [0, 0, 0], sizes = [1, 8, 32], strides = [1, 1, 1]} : vector<4x8x32xf32> to vector<1x8x32xf32>
    %86 = vector.shape_cast %85 : vector<1x8x32xf32> to vector<8x32xf32>
    %87 = vector.extract_strided_slice %84 {offsets = [1, 0, 0], sizes = [1, 8, 32], strides = [1, 1, 1]} : vector<4x8x32xf32> to vector<1x8x32xf32>
    %88 = vector.shape_cast %87 : vector<1x8x32xf32> to vector<8x32xf32>
    %89 = vector.extract_strided_slice %84 {offsets = [2, 0, 0], sizes = [1, 8, 32], strides = [1, 1, 1]} : vector<4x8x32xf32> to vector<1x8x32xf32>
    %90 = vector.shape_cast %89 : vector<1x8x32xf32> to vector<8x32xf32>
    %91 = vector.extract_strided_slice %84 {offsets = [3, 0, 0], sizes = [1, 8, 32], strides = [1, 1, 1]} : vector<4x8x32xf32> to vector<1x8x32xf32>
    %92 = vector.shape_cast %91 : vector<1x8x32xf32> to vector<8x32xf32>
    %93 = tpu.concatenate %86, %88, %90, %92 in 1 : vector<8x32xf32>, vector<8x32xf32>, vector<8x32xf32>, vector<8x32xf32> -> vector<8x128xf32>
    %94 = arith.truncf %93 : vector<8x128xf32> to vector<8x128xbf16>
    %c0_32 = arith.constant 0 : index
    %c0_33 = arith.constant 0 : index
    %c0_34 = arith.constant 0 : index
    %95 = vector.load %arg7[%c0_32, %c0_33, %c0_34] : memref<1x128x128xbf16, #tpu.memory_space<vmem>>, vector<1x128x128xbf16>
    %96 = vector.shape_cast %95 : vector<1x128x128xbf16> to vector<128x128xbf16>
    %cst_35 = arith.constant dense<0.000000e+00> : vector<8x128xf32>
    %97 = tpu.matmul %94, %96, %cst_35 {dimension_numbers = #tpu.dot_dimension_numbers<[1], [0], [0], [1], [0, 0, 1, 1], [], []>} : vector<8x128xbf16>, vector<128x128xbf16>, vector<8x128xf32> -> vector<8x128xf32>
    %c0_36 = arith.constant 0 : index
    %c0_37 = arith.constant 0 : index
    %c0_38 = arith.constant 0 : index
    %98 = vector.load %arg13[%c0_36, %c0_37, %c0_38] : memref<1x1x128xf32, #tpu.memory_space<vmem>>, vector<1x1x128xf32>
    %99 = vector.shape_cast %98 : vector<1x1x128xf32> to vector<1x128xf32>
    %100 = vector.broadcast %99 : vector<1x128xf32> to vector<8x128xf32>
    %101 = arith.addf %97, %100 : vector<8x128xf32>
    %102 = arith.addf %3, %101 : vector<8x128xf32>
    %c0_39 = arith.constant 0 : index
    %c0_40 = arith.constant 0 : index
    %c0_41 = arith.constant 0 : index
    %103 = vector.load %arg16[%c0_39, %c0_40, %c0_41] : memref<1x1x128xf32, #tpu.memory_space<vmem>>, vector<1x1x128xf32>
    %104 = vector.shape_cast %103 : vector<1x1x128xf32> to vector<1x128xf32>
    %c0_42 = arith.constant 0 : index
    %c0_43 = arith.constant 0 : index
    %c0_44 = arith.constant 0 : index
    %105 = vector.load %arg17[%c0_42, %c0_43, %c0_44] : memref<1x1x128xf32, #tpu.memory_space<vmem>>, vector<1x1x128xf32>
    %106 = vector.shape_cast %105 : vector<1x1x128xf32> to vector<1x128xf32>
    %cst_45 = arith.constant dense<0.000000e+00> : vector<8xf32>
    %107 = vector.multi_reduction <add>, %102, %cst_45 [1] : vector<8x128xf32> to vector<8xf32>
    %108 = vector.shape_cast %107 : vector<8xf32> to vector<8x1xf32>
    %cst_46 = arith.constant 1.280000e+02 : f32
    %109 = vector.broadcast %cst_46 : f32 to vector<8x1xf32>
    %110 = arith.divf %108, %109 : vector<8x1xf32>
    %111 = vector.broadcast %110 : vector<8x1xf32> to vector<8x128xf32>
    %112 = arith.subf %102, %111 : vector<8x128xf32>
    %113 = arith.mulf %112, %112 : vector<8x128xf32>
    %cst_47 = arith.constant dense<0.000000e+00> : vector<8xf32>
    %114 = vector.multi_reduction <add>, %113, %cst_47 [1] : vector<8x128xf32> to vector<8xf32>
    %115 = vector.shape_cast %114 : vector<8xf32> to vector<8x1xf32>
    %cst_48 = arith.constant 1.280000e+02 : f32
    %116 = vector.broadcast %cst_48 : f32 to vector<8x1xf32>
    %117 = arith.divf %115, %116 : vector<8x1xf32>
    %118 = vector.broadcast %110 : vector<8x1xf32> to vector<8x128xf32>
    %119 = arith.subf %102, %118 : vector<8x128xf32>
    %cst_49 = arith.constant 9.99999974E-6 : f32
    %120 = vector.broadcast %cst_49 : f32 to vector<8x1xf32>
    %121 = arith.addf %117, %120 : vector<8x1xf32>
    %122 = math.rsqrt %121 : vector<8x1xf32>
    %123 = vector.broadcast %122 : vector<8x1xf32> to vector<8x128xf32>
    %124 = arith.mulf %119, %123 : vector<8x128xf32>
    %125 = vector.broadcast %104 : vector<1x128xf32> to vector<8x128xf32>
    %126 = arith.mulf %124, %125 : vector<8x128xf32>
    %127 = vector.broadcast %106 : vector<1x128xf32> to vector<8x128xf32>
    %128 = arith.addf %126, %127 : vector<8x128xf32>
    %129 = arith.truncf %128 : vector<8x128xf32> to vector<8x128xbf16>
    %c0_50 = arith.constant 0 : index
    %c0_51 = arith.constant 0 : index
    %c0_52 = arith.constant 0 : index
    %130 = vector.load %arg8[%c0_50, %c0_51, %c0_52] : memref<1x128x256xbf16, #tpu.memory_space<vmem>>, vector<1x128x256xbf16>
    %131 = vector.shape_cast %130 : vector<1x128x256xbf16> to vector<128x256xbf16>
    %cst_53 = arith.constant dense<0.000000e+00> : vector<8x256xf32>
    %132 = tpu.matmul %129, %131, %cst_53 {dimension_numbers = #tpu.dot_dimension_numbers<[1], [0], [0], [1], [0, 0, 1, 1], [], []>} : vector<8x128xbf16>, vector<128x256xbf16>, vector<8x256xf32> -> vector<8x256xf32>
    %c0_54 = arith.constant 0 : index
    %c0_55 = arith.constant 0 : index
    %c0_56 = arith.constant 0 : index
    %133 = vector.load %arg14[%c0_54, %c0_55, %c0_56] : memref<1x1x256xf32, #tpu.memory_space<vmem>>, vector<1x1x256xf32>
    %134 = vector.shape_cast %133 : vector<1x1x256xf32> to vector<1x256xf32>
    %135 = vector.broadcast %134 : vector<1x256xf32> to vector<8x256xf32>
    %136 = arith.addf %132, %135 : vector<8x256xf32>
    %cst_57 = arith.constant 0.000000e+00 : f32
    %137 = vector.broadcast %cst_57 : f32 to vector<8x256xf32>
    %138 = arith.maximumf %136, %137 : vector<8x256xf32>
    %139 = arith.truncf %138 : vector<8x256xf32> to vector<8x256xbf16>
    %c0_58 = arith.constant 0 : index
    %c0_59 = arith.constant 0 : index
    %c0_60 = arith.constant 0 : index
    %140 = vector.load %arg9[%c0_58, %c0_59, %c0_60] : memref<1x256x128xbf16, #tpu.memory_space<vmem>>, vector<1x256x128xbf16>
    %141 = vector.shape_cast %140 : vector<1x256x128xbf16> to vector<256x128xbf16>
    %cst_61 = arith.constant dense<0.000000e+00> : vector<8x128xf32>
    %142 = tpu.matmul %139, %141, %cst_61 {dimension_numbers = #tpu.dot_dimension_numbers<[1], [0], [0], [1], [0, 0, 1, 1], [], []>} : vector<8x256xbf16>, vector<256x128xbf16>, vector<8x128xf32> -> vector<8x128xf32>
    %c0_62 = arith.constant 0 : index
    %c0_63 = arith.constant 0 : index
    %c0_64 = arith.constant 0 : index
    %143 = vector.load %arg15[%c0_62, %c0_63, %c0_64] : memref<1x1x128xf32, #tpu.memory_space<vmem>>, vector<1x1x128xf32>
    %144 = vector.shape_cast %143 : vector<1x1x128xf32> to vector<1x128xf32>
    %145 = vector.broadcast %144 : vector<1x128xf32> to vector<8x128xf32>
    %146 = arith.addf %142, %145 : vector<8x128xf32>
    %147 = arith.addf %128, %146 : vector<8x128xf32>
    %c0_65 = arith.constant 0 : index
    %c0_66 = arith.constant 0 : index
    %c0_67 = arith.constant 0 : index
    %148 = vector.load %arg18[%c0_65, %c0_66, %c0_67] : memref<1x1x128xf32, #tpu.memory_space<vmem>>, vector<1x1x128xf32>
    %149 = vector.shape_cast %148 : vector<1x1x128xf32> to vector<1x128xf32>
    %c0_68 = arith.constant 0 : index
    %c0_69 = arith.constant 0 : index
    %c0_70 = arith.constant 0 : index
    %150 = vector.load %arg19[%c0_68, %c0_69, %c0_70] : memref<1x1x128xf32, #tpu.memory_space<vmem>>, vector<1x1x128xf32>
    %151 = vector.shape_cast %150 : vector<1x1x128xf32> to vector<1x128xf32>
    %cst_71 = arith.constant dense<0.000000e+00> : vector<8xf32>
    %152 = vector.multi_reduction <add>, %147, %cst_71 [1] : vector<8x128xf32> to vector<8xf32>
    %153 = vector.shape_cast %152 : vector<8xf32> to vector<8x1xf32>
    %cst_72 = arith.constant 1.280000e+02 : f32
    %154 = vector.broadcast %cst_72 : f32 to vector<8x1xf32>
    %155 = arith.divf %153, %154 : vector<8x1xf32>
    %156 = vector.broadcast %155 : vector<8x1xf32> to vector<8x128xf32>
    %157 = arith.subf %147, %156 : vector<8x128xf32>
    %158 = arith.mulf %157, %157 : vector<8x128xf32>
    %cst_73 = arith.constant dense<0.000000e+00> : vector<8xf32>
    %159 = vector.multi_reduction <add>, %158, %cst_73 [1] : vector<8x128xf32> to vector<8xf32>
    %160 = vector.shape_cast %159 : vector<8xf32> to vector<8x1xf32>
    %cst_74 = arith.constant 1.280000e+02 : f32
    %161 = vector.broadcast %cst_74 : f32 to vector<8x1xf32>
    %162 = arith.divf %160, %161 : vector<8x1xf32>
    %163 = vector.broadcast %155 : vector<8x1xf32> to vector<8x128xf32>
    %164 = arith.subf %147, %163 : vector<8x128xf32>
    %cst_75 = arith.constant 9.99999974E-6 : f32
    %165 = vector.broadcast %cst_75 : f32 to vector<8x1xf32>
    %166 = arith.addf %162, %165 : vector<8x1xf32>
    %167 = math.rsqrt %166 : vector<8x1xf32>
    %168 = vector.broadcast %167 : vector<8x1xf32> to vector<8x128xf32>
    %169 = arith.mulf %164, %168 : vector<8x128xf32>
    %170 = vector.broadcast %149 : vector<1x128xf32> to vector<8x128xf32>
    %171 = arith.mulf %169, %170 : vector<8x128xf32>
    %172 = vector.broadcast %151 : vector<1x128xf32> to vector<8x128xf32>
    %173 = arith.addf %171, %172 : vector<8x128xf32>
    %c0_76 = arith.constant 0 : index
    %c0_77 = arith.constant 0 : index
    %174 = vector.load %arg22[%c0_76, %c0_77] : memref<8x128xf32, #tpu.memory_space<vmem>>, vector<8x128xf32>
    tpu.vector_store %arg22[%c0_76, %c0_77], %173 {strides = array<i32>} : memref<8x128xf32, #tpu.memory_space<vmem>>, vector<8x128xf32>,
    %c1_i32 = arith.constant 1 : i32
    %175 = arith.cmpi eq, %arg1, %c1_i32 : i32
    %176 = arith.extui %175 : i1 to i32
    %c0_i32_78 = arith.constant 0 : i32
    %177 = arith.cmpi ne, %176, %c0_i32_78 : i32
    scf.if %177 {
      %178 = arith.truncf %173 : vector<8x128xf32> to vector<8x128xbf16>
      %c0_79 = arith.constant 0 : index
      %c0_80 = arith.constant 0 : index
      %179 = vector.load %arg20[%c0_79, %c0_80] : memref<128x128xbf16, #tpu.memory_space<vmem>>, vector<128x128xbf16>
      %cst_81 = arith.constant dense<0.000000e+00> : vector<8x128xf32>
      %180 = tpu.matmul %178, %179, %cst_81 {dimension_numbers = #tpu.dot_dimension_numbers<[1], [0], [0], [1], [0, 0, 1, 1], [], []>} : vector<8x128xbf16>, vector<128x128xbf16>, vector<8x128xf32> -> vector<8x128xf32>
      %c0_82 = arith.constant 0 : index
      %c0_83 = arith.constant 0 : index
      %c0_84 = arith.constant 0 : index
      %181 = vector.load %arg21[%c0_82, %c0_83, %c0_84] : memref<1x8x128xf32, #tpu.memory_space<vmem>>, vector<1x8x128xf32>
      %182 = vector.shape_cast %181 : vector<1x8x128xf32> to vector<8x128xf32>
      %183 = vector.shape_cast %180 : vector<8x128xf32> to vector<1x8x128xf32>
      tpu.vector_store %arg21[%c0_82, %c0_83, %c0_84], %183 {strides = array<i32>} : memref<1x8x128xf32, #tpu.memory_space<vmem>>, vector<1x8x128xf32>,
    } else {
    }
    return
  }
  func.func @transform_0(%arg0: i32, %arg1: i32) -> (i32, i32, i32) {
    %c0_i32 = arith.constant 0 : i32
    %c0_i32_0 = arith.constant 0 : i32
    %c0_i32_1 = arith.constant 0 : i32
    return %arg0, %c0_i32, %c0_i32_0 : i32, i32, i32
  }
  func.func @transform_1(%arg0: i32, %arg1: i32) -> (i32, i32, i32) {
    %c0_i32 = arith.constant 0 : i32
    %c0_i32_0 = arith.constant 0 : i32
    %c0_i32_1 = arith.constant 0 : i32
    return %arg0, %c0_i32, %c0_i32_0 : i32, i32, i32
  }
  func.func @transform_2(%arg0: i32, %arg1: i32) -> (i32, i32, i32) {
    %c0_i32 = arith.constant 0 : i32
    %c0_i32_0 = arith.constant 0 : i32
    %c0_i32_1 = arith.constant 0 : i32
    return %arg1, %c0_i32, %c0_i32_0 : i32, i32, i32
  }
  func.func @transform_3(%arg0: i32, %arg1: i32) -> (i32, i32, i32) {
    %c0_i32 = arith.constant 0 : i32
    %c0_i32_0 = arith.constant 0 : i32
    %c0_i32_1 = arith.constant 0 : i32
    return %arg1, %c0_i32, %c0_i32_0 : i32, i32, i32
  }
  func.func @transform_4(%arg0: i32, %arg1: i32) -> (i32, i32, i32) {
    %c0_i32 = arith.constant 0 : i32
    %c0_i32_0 = arith.constant 0 : i32
    %c0_i32_1 = arith.constant 0 : i32
    return %arg1, %c0_i32, %c0_i32_0 : i32, i32, i32
  }
  func.func @transform_5(%arg0: i32, %arg1: i32) -> (i32, i32, i32) {
    %c0_i32 = arith.constant 0 : i32
    %c0_i32_0 = arith.constant 0 : i32
    %c0_i32_1 = arith.constant 0 : i32
    return %arg1, %c0_i32, %c0_i32_0 : i32, i32, i32
  }
  func.func @transform_6(%arg0: i32, %arg1: i32) -> (i32, i32, i32) {
    %c0_i32 = arith.constant 0 : i32
    %c0_i32_0 = arith.constant 0 : i32
    %c0_i32_1 = arith.constant 0 : i32
    return %arg1, %c0_i32, %c0_i32_0 : i32, i32, i32
  }
  func.func @transform_7(%arg0: i32, %arg1: i32) -> (i32, i32, i32) {
    %c0_i32 = arith.constant 0 : i32
    %c0_i32_0 = arith.constant 0 : i32
    %c0_i32_1 = arith.constant 0 : i32
    return %arg1, %c0_i32, %c0_i32_0 : i32, i32, i32
  }
  func.func @transform_8(%arg0: i32, %arg1: i32) -> (i32, i32, i32) {
    %c0_i32 = arith.constant 0 : i32
    %c0_i32_0 = arith.constant 0 : i32
    %c0_i32_1 = arith.constant 0 : i32
    return %arg1, %c0_i32, %c0_i32_0 : i32, i32, i32
  }
  func.func @transform_9(%arg0: i32, %arg1: i32) -> (i32, i32, i32) {
    %c0_i32 = arith.constant 0 : i32
    %c0_i32_0 = arith.constant 0 : i32
    %c0_i32_1 = arith.constant 0 : i32
    return %arg1, %c0_i32, %c0_i32_0 : i32, i32, i32
  }
  func.func @transform_10(%arg0: i32, %arg1: i32) -> (i32, i32, i32) {
    %c0_i32 = arith.constant 0 : i32
    %c0_i32_0 = arith.constant 0 : i32
    %c0_i32_1 = arith.constant 0 : i32
    return %arg1, %c0_i32, %c0_i32_0 : i32, i32, i32
  }
  func.func @transform_11(%arg0: i32, %arg1: i32) -> (i32, i32, i32) {
    %c0_i32 = arith.constant 0 : i32
    %c0_i32_0 = arith.constant 0 : i32
    %c0_i32_1 = arith.constant 0 : i32
    return %arg1, %c0_i32, %c0_i32_0 : i32, i32, i32
  }
  func.func @transform_12(%arg0: i32, %arg1: i32) -> (i32, i32, i32) {
    %c0_i32 = arith.constant 0 : i32
    %c0_i32_0 = arith.constant 0 : i32
    %c0_i32_1 = arith.constant 0 : i32
    return %arg1, %c0_i32, %c0_i32_0 : i32, i32, i32
  }
  func.func @transform_13(%arg0: i32, %arg1: i32) -> (i32, i32, i32) {
    %c0_i32 = arith.constant 0 : i32
    %c0_i32_0 = arith.constant 0 : i32
    %c0_i32_1 = arith.constant 0 : i32
    return %arg1, %c0_i32, %c0_i32_0 : i32, i32, i32
  }
  func.func @transform_14(%arg0: i32, %arg1: i32) -> (i32, i32, i32) {
    %c0_i32 = arith.constant 0 : i32
    %c0_i32_0 = arith.constant 0 : i32
    %c0_i32_1 = arith.constant 0 : i32
    return %arg1, %c0_i32, %c0_i32_0 : i32, i32, i32
  }
  func.func @transform_15(%arg0: i32, %arg1: i32) -> (i32, i32, i32) {
    %c0_i32 = arith.constant 0 : i32
    %c0_i32_0 = arith.constant 0 : i32
    %c0_i32_1 = arith.constant 0 : i32
    return %arg1, %c0_i32, %c0_i32_0 : i32, i32, i32
  }
  func.func @transform_16(%arg0: i32, %arg1: i32) -> (i32, i32, i32) {
    %c0_i32 = arith.constant 0 : i32
    %c0_i32_0 = arith.constant 0 : i32
    %c0_i32_1 = arith.constant 0 : i32
    return %arg1, %c0_i32, %c0_i32_0 : i32, i32, i32
  }
  func.func @transform_17(%arg0: i32, %arg1: i32) -> (i32, i32, i32) {
    %c0_i32 = arith.constant 0 : i32
    %c0_i32_0 = arith.constant 0 : i32
    %c0_i32_1 = arith.constant 0 : i32
    return %arg1, %c0_i32, %c0_i32_0 : i32, i32, i32
  }
  func.func @transform_18(%arg0: i32, %arg1: i32) -> (i32, i32) {
    %c0_i32 = arith.constant 0 : i32
    %c0_i32_0 = arith.constant 0 : i32
    %c0_i32_1 = arith.constant 0 : i32
    return %c0_i32, %c0_i32_0 : i32, i32
  }
  func.func @transform_19(%arg0: i32, %arg1: i32) -> (i32, i32, i32) {
    %c0_i32 = arith.constant 0 : i32
    %c0_i32_0 = arith.constant 0 : i32
    %c0_i32_1 = arith.constant 0 : i32
    return %arg0, %c0_i32, %c0_i32_0 : i32, i32, i32
  }
}

</mosaic_0001>

<bundles_post_ra>
// kernel: transformer_forward.1
= control target key start
LH: loop header
LB: loop body
LE: loop exit
PB: predicated region body
PF: predicated region fallthrough
CT: control target
= control target key end

     0   :  { %s3346_s0 = inlined_call_operand.vmem [shape: f32[2,8,128], index: 0, kind: input, shape index: {}]   ;;  %s3347_s1 = inlined_call_operand.vmem [shape: f32[2,1,8], index: 1, kind: input, shape index: {}]   ;;  %s3348_s2 = inlined_call_operand.vmem [shape: bf16[2,128,128], index: 2, kind: input, shape index: {}]   ;;  %s3349_s3 = inlined_call_operand.vmem [shape: bf16[2,128,128], index: 3, kind: input, shape index: {}]   ;;  %s3350_s4 = inlined_call_operand.vmem [shape: bf16[2,128,128], index: 4, kind: input, shape index: {}]   ;;  %s3351_s5 = inlined_call_operand.vmem [shape: bf16[2,128,128], index: 5, kind: input, shape index: {}]   ;;  %s3352_s6 = inlined_call_operand.vmem [shape: bf16[2,128,256], index: 6, kind: input, shape index: {}]   ;;  %s3353_s7 = inlined_call_operand.vmem [shape: bf16[2,256,128], index: 7, kind: input, shape index: {}]   ;;  %s3354_s8 = inlined_call_operand.vmem [shape: f32[2,1,128], index: 8, kind: input, shape index: {}]   ;;  %s3355_s9 = inlined_call_operand.vmem [shape: f32[2,1,128], index: 9, kind: input, shape index: {}]   ;;  %s3356_s10 = inlined_call_operand.vmem [shape: f32[2,1,128], index: 10, kind: input, shape index: {}]   ;;  %s3357_s11 = inlined_call_operand.vmem [shape: f32[2,1,128], index: 11, kind: input, shape index: {}]   ;;  %s3358_s12 = inlined_call_operand.vmem [shape: f32[2,1,256], index: 12, kind: input, shape index: {}]   ;;  %s3359_s13 = inlined_call_operand.vmem [shape: f32[2,1,128], index: 13, kind: input, shape index: {}]   ;;  %s3360_s14 = inlined_call_operand.vmem [shape: f32[2,1,128], index: 14, kind: input, shape index: {}]   ;;  %s3361_s15 = inlined_call_operand.vmem [shape: f32[2,1,128], index: 15, kind: input, shape index: {}]   ;;  %s3362_s16 = inlined_call_operand.vmem [shape: f32[2,1,128], index: 16, kind: input, shape index: {}]   ;;  %s3363_s17 = inlined_call_operand.vmem [shape: f32[2,1,128], index: 17, kind: input, shape index: {}]   ;;  %s3364_s18 = inlined_call_operand.vmem [shape: bf16[128,128], index: 18, kind: input, shape index: {}]   ;;  %s3365_s19 = inlined_call_operand.hbm [shape: f32[2,8,128], index: 19, kind: output, shape index: {}]  }
   0x1   :  { %3385 = sst [smem:[#allocation23_spill]] %s3346_s0 }
   0x2   :  { %3386 = sst [smem:[#allocation24_spill]] %s3347_s1 }
   0x3   :  { %3387 = sst [smem:[#allocation25_spill]] %s3348_s2 }
   0x4   :  { %3388 = sst [smem:[#allocation26_spill]] %s3349_s3 }
   0x5   :  { %3389 = sst [smem:[#allocation27_spill]] %s3350_s4 }
   0x6   :  { %3390 = sst [smem:[#allocation28_spill]] %s3351_s5 }
   0x7   :  { %3391 = sst [smem:[#allocation29_spill]] %s3352_s6 }
   0x8   :  { %3392 = sst [smem:[#allocation30_spill]] %s3353_s7 }
   0x9   :  { %3393 = sst [smem:[#allocation31_spill]] %s3356_s10 }
   0xa   :  { %3394 = sst [smem:[#allocation32_spill]] %s3357_s11 }
   0xb   :  { %3395 = sst [smem:[#allocation33_spill]] %s3358_s12 }
   0xc   :  { %3396 = sst [smem:[#allocation34_spill]] %s3360_s14 }
   0xd   :  { %3397 = sst [smem:[#allocation35_spill]] %s3361_s15 }
   0xe   :  { %3398 = sst [smem:[#allocation36_spill]] %s3362_s16 }
   0xf   :  { %3399 = sst [smem:[#allocation37_spill]] %s3363_s17 }
  0x10   :  { %3400 = sst [smem:[#allocation38_spill]] %s3364_s18 }
  0x11   :  { %3401 = sst [smem:[#allocation39_spill]] %s3365_s19 }
  0x12   :  { %24 = vsyncpa [#allocation4], 0 }
  0x13   :  { %26 = vsyncpa [#allocation4 + $0x1], 0  ;;  %s2918_s0 = smov 0   ;;  %s2920_s30 = smov 0  }
  0x14   :  { %s2922_s20 = smov 0   ;;  %s2924_s21 = smov 0  }
  0x15   :  { %s2926_s1 = smov 0   ;;  %s2928_s22 = smov 0  }
  0x16   :  { %s2930_s2 = smov 0   ;;  %s2932_s23 = smov 0  }
  0x17 LB: > { %3402 = sst [smem:[#allocation6_spill]] %s2783_s0  ;;  %s2209_s24 = sadd.s32 4294967295, %s2811_s23   ;;  %s2811_s23 = sphi %s2932_s23, %s32_s23   ;;  %s2807_s2 = sphi %s2930_s2, %s3470_s2   ;;  %s2803_s22 = sphi %s2928_s22, %s3469_s22   ;;  %s2799_s1 = sphi %s2926_s1, %s3468_s1   ;;  %s2795_s21 = sphi %s2924_s21, %s3467_s21   ;;  %s2791_s20 = sphi %s2922_s20, %s3466_s20   ;;  %s2787_s30 = sphi %s2920_s30, %s3465_s30   ;;  %s2783_s0 = sphi %s2918_s0, %s3464_s0  }
  0x18   : > { %3403 = sst [smem:[#allocation7_spill]] %s2787_s30  ;;  %s2210_s25 = sadd.s32 4294967294, %s2811_s23  }
  0x19   : > { %3404 = sst [smem:[#allocation8_spill]] %s2791_s20  ;;  %s41_s3 = sadd.s32 1, %s2803_s22 }
  0x1a   : > { %3405 = sst [smem:[#allocation9_spill]] %s2795_s21  ;;  %p42_p0 = scmp.ge.s32.totalorder %s41_s3, 2 }
  0x1b   : > { %3406 = sst [smem:[#allocation10_spill]] %s2799_s1  ;;  %s44_s26 = sadd.s32 1, %s2807_s2 }
  0x1c   : > { %3407 = sst [smem:[#allocation11_spill]] %s2803_s22  ;;  %p550_p1 = scmp.ne.s32.totalorder %s2791_s20, %s2787_s30 }
  0x1d   : > { %3408 = sst [smem:[#allocation12_spill]] %s2807_s2  ;;  %p551_p2 = scmp.eq.s32.totalorder %s2209_s24, 3 }
  0x1e   : > { %3409 = sst [smem:[#allocation13_spill]] %s2811_s23  ;;  %s3472_s3 = smov (%p42_p0, %s41_s3), 0 }
  0x1f   : > { %3410 = sst [smem:[#allocation14_spill]] %s3472_s3  ;;  %s3474_s26 = smov (!%p42_p0, %s44_s26), %s2807_s2 }
  0x20   : > { %p2967_p3 = por %p551_p2, %p550_p1  ;;  %p556_p4 = scmp.ne.s32.totalorder %s2787_s30, %s2783_s0 }
  0x21   : > { %p46_p5 = scmp.ge.s32.totalorder %s3474_s26, 2  ;;  %p557_p6 = scmp.eq.s32.totalorder %s2210_s25, 3 }
  0x22   : > { %s3411_s27 = scalar_select %p2967_p3, 1, 0 }
  0x23   : > { %p2213_p7 = scmp.ge.s32.totalorder %s2811_s23, 1  ;;  %p700_p8 = scmp.lt.s32.totalorder %s2811_s23, 5 }
  0x24   : > { %3412 = sst [smem:[#allocation15_spill]] %s3411_s27  ;;  %s3476_s26 = smov (%p46_p5, %s3474_s26), 0 }
  0x25   : > { %3413 = sst [smem:[#allocation16_spill]] %s3476_s26  ;;  %p2977_p9 = por %p557_p6, %p556_p4 }
  0x26   : > { %p701_p10 = pnand %p2213_p7, %p700_p8  ;;  %s537_s29 = ssub.s32 %s2807_s2, %s3476_s26 }
  0x27   : > { %s3414_s28 = scalar_select %p2977_p9, 1, 0 }
  0x28   : > { %s540_s24 = sadd.s32 1, %s2791_s20  ;;  %p538_p11 = scmp.eq.s32.totalorder %s537_s29, 0 }
  0x29   : > { %3415 = sst [smem:[#allocation17_spill]] %s3414_s28  ;;  %704 = sbr.rel (%p701_p10) target bundleno = 2169 (0x879), region = 96 }
  0x2a   : > { %s2985_s3 = scalar_select %p538_p11, %s2791_s20, %s540_s24  }
  0x2c   : > { %3416 = sst [smem:[#allocation18_spill]] %s2985_s3 }
  0x2e   : > { %s3370_s25 = sand.u32 1, %s2787_s30   ;;  %p819_p12 = scmp.lt.s32.totalorder %s2799_s1, 1 }
  0x2f   : > { %s2991_s22 = sshll.u32 %s3370_s25, 3  ;;  %p826_p13 = scmp.lt.s32.totalorder %s2795_s21, 1 }
  0x30   : > { %s2995_s28 = scalar_select %p819_p12, %s2799_s1, 1 }
  0x31   : > { %s2998_s29 = scalar_select %p826_p13, %s2795_s21, 1 }
  0x32   : > { %s2215_s24 = sshll.u32 %s2995_s28, 3  ;;  %s3418_s23 = sld [smem:[#allocation23_spill]] }
  0x33   : > { %s2531_s27 = sshll.u32 %s2998_s29, 6  ;;  %s3419_s18 = sld [smem:[#allocation25_spill]] }
  0x34   : > { %s3420_s15 = sld [smem:[#allocation26_spill]]  ;;  %s2228_s17 = sshll.u32 %s2998_s29, 1 }
  0x35   : > { %s3421_s4 = sld [smem:[#allocation27_spill]]  ;;  %s874_s3 = scalar_lea.vmem %s3359_s13, %s2998_s29 }
  0x36   : > { %s3422_s5 = sld [smem:[#allocation28_spill]] }
  0x37   : > { %s3424_s6 = sld [smem:[#allocation29_spill]] }
  0x38   : > { %s822_s19 = scalar_lea.vmem %s3418_s23, %s2215_s24  ;;  %s3426_s7 = sld [smem:[#allocation30_spill]] }
  0x39   : > { %s3012_s21 = scalar_lea.vmem %s3419_s18, %s2531_s27  ;;  %s2535_s18 = sshll.u32 %s2998_s29, 7 }
  0x3a   : > { %s3017_s14 = scalar_lea.vmem %s3420_s15, %s2531_s27  ;;  %s3430_s12 = sld [smem:[#allocation33_spill]] }
  0x3b   : > { %s3022_s0 = scalar_lea.vmem %s3421_s4, %s2531_s27  ;;  %s3434_s16 = sld [smem:[#allocation36_spill]] }
  0x3c   : > { %s3027_s30 = scalar_lea.vmem %s3422_s5, %s2531_s27  ;;  %s3432_s27 = sld [smem:[#allocation34_spill]] }
  0x3d   : > { %3423 = sst [smem:[#allocation19_spill]] %s3027_s30  ;;  %s3037_s24 = scalar_lea.vmem %s3424_s6, %s2535_s18 }
  0x3e   : > { %3425 = sst [smem:[#allocation20_spill]] %s3037_s24  ;;  %s3042_s25 = scalar_lea.vmem %s3426_s7, %s2535_s18 }
  0x3f   : > { %3427 = sst [smem:[#allocation21_spill]] %s3042_s25 }
  0x40   : > { %s3060_s24 = scalar_lea.vmem %s3430_s12, %s2228_s17  ;;  %s3433_s30 = sld [smem:[#allocation35_spill]] }
  0x41   : > { %3431 = sst [smem:[#allocation22_spill]] %s3060_s24  ;;  %s883_s11 = scalar_lea.vmem %s3434_s16, %s2998_s29 }
  0x42   : > { %s877_s7 = scalar_lea.vmem %s3432_s27, %s2998_s29  ;;  %s3435_s17 = sld [smem:[#allocation37_spill]] }
  0x43   : > { %s818_s12 = scalar_lea.vmem [#allocation3], %s2991_s22  ;;  %s3436_s24 = sld [smem:[#allocation9_spill]] }
  0x46   : > { %s880_s25 = scalar_lea.vmem %s3433_s30, %s2998_s29 }
  0x48   : > { %s886_s15 = scalar_lea.vmem %s3435_s17, %s2998_s29 }
  0x49   : > { %p2229_p0 = scmp.ne.s32.totalorder %s3436_s24, 0 }
  0x4b   : > { %891 = sbr.rel (%p2229_p0) target bundleno = 82 (0x52), region = 100 }
  0x50   : > { %v892_v0 = vld [vmem:[%s822_s19] sm:$0xff] }
  0x51   : > { %893 = vst [vmem:[#allocation2] sm:$0xff] %v892_v0 }
  0x52 PF: > { %v2544_v1 = vld [vmem:[%s3012_s21 + $0x38] sm:$0xff]  ;;  %v2543_v3 = vld [vmem:[%s3012_s21 + $0x30] sm:$0xff]  ;;  %v2542_v5 = vld [vmem:[%s3012_s21 + $0x28] sm:$0xff]  ;;  %s3437_s30 = scalar_lea.vmem %s3355_s9, %s2998_s29  ;;  %s3438_s16 = scalar_lea.vmem %s3354_s8, %s2998_s29  ;;  %vm1181_vm0 = vcmask 261120   ;;  %v1262_v43 = vlaneseq  ;;  %v2816_v49 = vmov 0.0   ;;  %vm1280_vm2 = vcmask 64512  }
  0x53   : > { %v2552_v2 = vld [vmem:[%s3017_s14 + $0x38] sm:$0xff]  ;;  %964 = vmatpush.bf16.msra.mxu0 %v2544_v1  ;;  %v2551_v4 = vld [vmem:[%s3017_s14 + $0x30] sm:$0xff]  ;;  %v2550_v6 = vld [vmem:[%s3017_s14 + $0x28] sm:$0xff]  ;;  %s2813_s24 = smov 32   ;;  %s2814_s27 = smov 64   ;;  %vm1332_vm3 = vcmask 1043456  }
  0x54   : > { %1045 = vmatpush.bf16.msra.mxu1 %v2552_v2  ;;  %v2541_v7 = vld [vmem:[%s3012_s21 + $0x20] sm:$0xff]  ;;  %v2540_v9 = vld [vmem:[%s3012_s21 + $0x18] sm:$0xff]  ;;  %v2539_v11 = vld [vmem:[%s3012_s21 + $0x10] sm:$0xff]  ;;  %s2815_s18 = smov 96   ;;  %v1263_v44 = vshrl.u32 %v1262_v43, 7  ;;  %v1265_v45 = vand.u32 127, %v1262_v43 }
  0x55   : > { %v2549_v8 = vld [vmem:[%s3017_s14 + $0x20] sm:$0xff]  ;;  %v2548_v10 = vld [vmem:[%s3017_s14 + $0x18] sm:$0xff]  ;;  %v2547_v12 = vld [vmem:[%s3017_s14 + $0x10] sm:$0xff]  ;;  %s3439_s20 = sld [smem:[#allocation24_spill]]  ;;  %vm1419_vm4 = vcmask 523264   ;;  %vm1421_vm5 = vcmask 785408  }
  0x56   : > { %v2538_v13 = vld [vmem:[%s3012_s21 + $0x8] sm:$0xff]  ;;  %v2537_v15 = vld [vmem:[%s3012_s21] sm:$0xff]  ;;  %vm1266_vm1 = vcmp.gt.s32.totalorder %v1265_v45, %v1263_v44  ;;  %v2560_v57 = vld [vmem:[%s3022_s0 + $0x38] sm:$0xff]  ;;  %s3441_s23 = sld [smem:[#allocation31_spill]] }
  0x57   : > { %965 = vmatpush.bf16.msra.mxu0 %v2543_v3  ;;  %v2546_v14 = vld [vmem:[%s3017_s14 + $0x8] sm:$0xff]  ;;  %v2545_v16 = vld [vmem:[%s3017_s14] sm:$0xff]  ;;  %v1267_v50 = vsel %vm1266_vm1, -1e+09, %v2816_v49  ;;  %1126 = vmatpush.bf16.msra.mxu2 %v2560_v57  ;;  %v2559_v58 = vld [vmem:[%s3022_s0 + $0x30] sm:$0xff]  ;;  %s3443_s26 = sld [smem:[#allocation19_spill]] }
  0x58   : > { %1046 = vmatpush.bf16.msra.mxu1 %v2551_v4  ;;  %v3100_v17 = vld [vmem:[#allocation2] sm:$0xff]  ;;  %v2558_v59 = vld [vmem:[%s3022_s0 + $0x28] sm:$0xff]  ;;  %v2556_v61 = vld [vmem:[%s3022_s0 + $0x18] sm:$0xff]  ;;  %s3444_s6 = sld [smem:[#allocation20_spill]] }
  0x59   : > { %v3104_v18 = vpack.c.bf16 %v3100_v17, %v3100_v17  ;;  %v2686_v19 = vld [vmem:[%s3437_s30] ss:$0 sm:$0xff]  ;;  %v2555_v62 = vld [vmem:[%s3022_s0 + $0x10] sm:$0xff]  ;;  %v2554_v63 = vld [vmem:[%s3022_s0 + $0x8] sm:$0xff]  ;;  %s3445_s19 = sld [smem:[#allocation32_spill]] }
  0x5a   : > { %v2685_v22 = vld [vmem:[%s3438_s16] ss:$0 sm:$0xff]  ;;  %s3447_s14 = sld [smem:[#allocation21_spill]] }
  0x5b   : > { %966 = vmatpush.bf16.msra.mxu0 %v2542_v5  ;;  %s3440_s5 = scalar_lea.vmem %s3439_s20, %s2995_s28  ;;  %1127 = vmatpush.bf16.msra.mxu2 %v2559_v58  ;;  %v2557_v60 = vld [vmem:[%s3022_s0 + $0x20] sm:$0xff] }
  0x5c   : > { %1047 = vmatpush.bf16.msra.mxu1 %v2550_v6  ;;  %v2687_v52 = vld [vmem:[%s3440_s5] ss:$0 sm:$0xff]  ;;  %s3442_s1 = scalar_lea.vmem %s3441_s23, %s2998_s29 }
  0x5d   : > { %v2553_v1 = vld [vmem:[%s3022_s0] sm:$0xff] }
  0x5f   : > { %967 = vmatpush.bf16.msra.mxu0 %v2541_v7  ;;  %1128 = vmatpush.bf16.msra.mxu2 %v2558_v59  ;;  %s3446_s30 = scalar_lea.vmem %s3445_s19, %s2998_s29 }
  0x60   : > { %1048 = vmatpush.bf16.msra.mxu1 %v2549_v8 }
  0x63   : > { %968 = vmatpush.bf16.msra.mxu0 %v2540_v9  ;;  %1129 = vmatpush.bf16.msra.mxu2 %v2557_v60 }
  0x64   : > { %1049 = vmatpush.bf16.msra.mxu1 %v2548_v10 }
  0x67   : > { %969 = vmatpush.bf16.msra.mxu0 %v2539_v11  ;;  %1130 = vmatpush.bf16.msra.mxu2 %v2556_v61 }
  0x68   : > { %1050 = vmatpush.bf16.msra.mxu1 %v2547_v12 }
  0x6b   : > { %970 = vmatpush.bf16.msra.mxu0 %v2538_v13  ;;  %1131 = vmatpush.bf16.msra.mxu2 %v2555_v62 }
  0x6c   : > { %1051 = vmatpush.bf16.msra.mxu1 %v2546_v14 }
  0x6f   : > { %971 = vmatpush.bf16.msra.mxu0 %v2537_v15  ;;  %1132 = vmatpush.bf16.msra.mxu2 %v2554_v63 }
  0x70   : > { %1052 = vmatpush.bf16.msra.mxu1 %v2545_v16 }
  0x72   : > { %972 = vmatmul.bf16.vlgmr.msra.gmra.mxu0 %v3104_v18 }
  0x73   : > { %1053 = vmatmul.bf16.vlgmr.msra.gmra.mxu1 %v3104_v18  ;;  %1133 = vmatpush.bf16.msra.mxu2 %v2553_v1 }
  0x76   : > { %1134 = vmatmul.bf16.vlgmr.msra.gmra.mxu2 %v3104_v18 }
  0xef   : > { %v973_v20 = vpop.f32.mrf.mxu0 }
  0xf0   : > { %v1054_v21 = vpop.f32.mrf.mxu1  ;;  %v974_v25 = vadd.f32 %v2685_v22, %v973_v20 }
  0xf1   : > { %v1055_v23 = vadd.f32 %v2686_v19, %v1054_v21 }
  0xf2   : > { %v1149_v29 = vpack.c.bf16 %v974_v25, %v974_v25 }
  0xf3   : > { %1160 = vrot.lane.b32.xlu2 %v1055_v23, %s2813_s24  ;;  %1157 = vrot.lane.b32.xlu1 %v1055_v23, %s2814_s27  ;;  %v1163_v24 = vpack.c.bf16 %v1055_v23, %v1055_v23 }
  0xf4   : > { %1154 = vrot.lane.b32.xlu0 %v1055_v23, %s2815_s18 }
  0xf5   : > { %v1186_v26 = vsel %vm1181_vm0, %v1163_v24, 0 }
  0xf6   : > { %1195 = vmatpush.bf16.xpose.msra.mxu3 %v1186_v26 }
  0xf7   : > { %v975_v27 = vpop.f32.mrf.mxu0 }
  0xf8   : > { %v1056_v28 = vpop.f32.mrf.mxu1 }
  0xf9   : > { %v1135_v26 = vpop.f32.mrf.mxu2 }
  0xfb   : > { %1146 = vrot.lane.b32.xlu2 %v974_v25, %s2813_s24  ;;  %1143 = vrot.lane.b32.xlu1 %v974_v25, %s2814_s27 }
  0xfc   : > { %1140 = vrot.lane.b32.xlu0 %v974_v25, %s2815_s18  ;;  %v2688_v25 = vld [vmem:[%s3442_s1] ss:$0 sm:$0xff]  ;;  %s3453_s1 = sld [smem:[#allocation9_spill]] }
  0xfd   : > { %2326 = vmatmul.msk.bf16.vlgmr.msra.gmra.mxu3 %vm1181_vm0, %v1149_v29  ;;  %v1136_v27 = vadd.f32 %v2688_v25, %v1135_v26 }
  0xff   : > { %v1177_v28 = vpack.c.bf16 %v1136_v27, %v1136_v27 }
 0x101   : > { %v1334_v29 = vsel %vm1332_vm3, %v1177_v28, 0 }
 0x102   : > { %1343 = vmatpush.bf16.msrb.mxu2 %v1334_v29  ;;  %p2494_p1 = scmp.ne.s32.totalorder %s3453_s1, 1 }
 0x103   : > { %s3454_s17 = sld [smem:[#allocation38_spill]] (!%p2494_p1) }
 0x14d   : > { %v1161_v30 = vpop.permute.xlu2 %1160 }
 0x14e   : > { %v1166_v31 = vpack.c.bf16 %v1161_v30, %v1161_v30  ;;  %v1137_v30 = vpop.f32.mrf.mxu2 }
 0x150   : > { %v1243_v32 = vsel %vm1181_vm0, %v1166_v31, 0 }
 0x151   : > { %1252 = vmatpush.bf16.xpose.msrb.mxu0 %v1243_v32 }
 0x155   : > { %v1147_v33 = vpop.permute.xlu2 %1146 }
 0x156   : > { %v1152_v34 = vpack.c.bf16 %v1147_v33, %v1147_v33 }
 0x158   : > { %2329 = vmatmul.msk.bf16.vlgmr.msrb.gmra.mxu0 %vm1181_vm0, %v1152_v34 }
 0x165   : > { %v1158_v35 = vpop.permute.xlu1 %1157 }
 0x166   : > { %v1165_v36 = vpack.c.bf16 %v1158_v35, %v1158_v35  ;;  %v1155_v37 = vpop.permute.xlu0 %1154 }
 0x167   : > { %v1164_v38 = vpack.c.bf16 %v1155_v37, %v1155_v37 }
 0x168   : > { %v1224_v39 = vsel %vm1181_vm0, %v1165_v36, 0 }
 0x169   : > { %v1205_v40 = vsel %vm1181_vm0, %v1164_v38, 0 }
 0x16a   : > { %1214 = vmatpush.bf16.xpose.msrb.mxu3 %v1205_v40 }
 0x16d   : > { %v1144_v46 = vpop.permute.xlu1 %1143 }
 0x16e   : > { %v1141_v41 = vpop.permute.xlu0 %1140  ;;  %v1151_v47 = vpack.c.bf16 %v1144_v46, %v1144_v46 }
 0x16f   : > { %v1150_v42 = vpack.c.bf16 %v1141_v41, %v1141_v41 }
 0x171   : > { %2327 = vmatmul.msk.bf16.vlgmr.msrb.gmra.mxu3 %vm1181_vm0, %v1150_v42 }
 0x172   : > { %1233 = vmatpush.bf16.xpose.msra.mxu3 %v1224_v39 }
 0x180   : > { %v1197_v48 = vpop.f32.mrf.mxu3 }
 0x181   : > { %v1258_v51 = vmul.f32 0.17677669, %v1197_v48  ;;  %2328 = vmatmul.msk.bf16.vlgmr.msra.gmra.mxu3 %vm1181_vm0, %v1151_v47 }
 0x183   : > { %v1268_v53 = vadd.f32 %v1267_v50, %v1258_v51 }
 0x185   : > { %v1276_v54 = vadd.f32 %v2687_v52, %v1268_v53 }
 0x187   : > { %v1281_v55 = vsel %vm1280_vm2, %v1276_v54, -inf }
 0x188   : > { %1282 = vmax.xlane.f32.xlu0 %v1281_v55  ;;  %v1199_v56 = vpop.f32.mrf.mxu3 }
 0x1d5   : > { %v1254_v0 = vpop.f32.mrf.mxu0 }
 0x1d6   : > { %v1261_v15 = vmul.f32 0.17677669, %v1254_v0 }
 0x1d8   : > { %v1271_v20 = vadd.f32 %v1267_v50, %v1261_v15  ;;  %v2568_v15 = vld [vmem:[%s3443_s26 + $0x38] sm:$0xff] }
 0x1d9   : > { %1492 = vmatpush.bf16.msrb.mxu1 %v2568_v15 }
 0x1da   : > { %v1279_v23 = vadd.f32 %v2687_v52, %v1271_v20  ;;  %v2564_v20 = vld [vmem:[%s3443_s26 + $0x18] sm:$0xff] }
 0x1dc   : > { %v1290_v24 = vsel %vm1280_vm2, %v1279_v23, -inf }
 0x1dd   : > { %v1256_v2 = vpop.f32.mrf.mxu0 }
 0x1f4   : > { %v1216_v3 = vpop.f32.mrf.mxu3 }
 0x1f5   : > { %v1259_v4 = vmul.f32 0.17677669, %v1216_v3 }
 0x1f7   : > { %v1269_v5 = vadd.f32 %v1267_v50, %v1259_v4 }
 0x1f9   : > { %v1277_v6 = vadd.f32 %v2687_v52, %v1269_v5 }
 0x1fb   : > { %v1283_v7 = vpop.xlane.xlu0 %1282  ;;  %v1284_v8 = vsel %vm1280_vm2, %v1277_v6, -inf }
 0x1fc   : > { %v1293_v9 = vsub.f32 %v1276_v54, %v1283_v7  ;;  %1285 = vmax.xlane.f32.xlu1 %v1284_v8  ;;  %v1218_v10 = vpop.f32.mrf.mxu3 }
 0x1fe   : > { %v1297_v11 = vmul.f32 1.442695, %v1293_v9 }
 0x200   : > { %2695 = vpow2.f32 %v1297_v11 }
 0x204   : > { %v1235_v12 = vpop.f32.mrf.mxu3 }
 0x205   : > { %v1260_v13 = vmul.f32 0.17677669, %v1235_v12 }
 0x206   : > { %v2696_v14 = vpop.eup %2695 }
 0x207   : > { %v1270_v16 = vadd.f32 %v1267_v50, %v1260_v13  ;;  %v1305_v18 = vsel %vm1280_vm2, %v2696_v14, 0.0 }
 0x208   : > { %1306 = vadd.xlane.f32.xlu0 %v1305_v18  ;;  %v2566_v18 = vld [vmem:[%s3443_s26 + $0x28] sm:$0xff] }
 0x209   : > { %v1278_v19 = vadd.f32 %v2687_v52, %v1270_v16  ;;  %v2567_v16 = vld [vmem:[%s3443_s26 + $0x30] sm:$0xff] }
 0x20a   : > { %1493 = vmatpush.bf16.msrb.mxu1 %v2567_v16  ;;  %v2386_v16 = vld [vmem:[%s3444_s6 + $0x28] sm:$0xf0] }
 0x20b   : > { %v1287_v21 = vsel %vm1280_vm2, %v1278_v19, -inf }
 0x20c   : > { %1288 = vmax.xlane.f32.xlu2 %v1287_v21  ;;  %v1237_v22 = vpop.f32.mrf.mxu3  ;;  %v2563_v21 = vld [vmem:[%s3443_s26 + $0x10] sm:$0xff] }
 0x20d   : > { %v2562_v22 = vld [vmem:[%s3443_s26 + $0x8] sm:$0xff] }
 0x20e   : > { %1494 = vmatpush.bf16.msrb.mxu1 %v2566_v18 }
 0x214   : > { %1291 = vmax.xlane.f32.xlu2 %v1290_v24 }
 0x21c   : > { %1168 = vrot.lane.b32.xlu0 %v1136_v27, %s2815_s18 }
 0x26f   : > { %v1286_v31 = vpop.xlane.xlu1 %1285 }
 0x270   : > { %v1294_v32 = vsub.f32 %v1277_v6, %v1286_v31  ;;  %v2689_v31 = vld [vmem:[%s3446_s30] ss:$0 sm:$0xff] }
 0x272   : > { %v1299_v33 = vmul.f32 1.442695, %v1294_v32 }
 0x274   : > { %2697 = vpow2.f32 %v1299_v33 }
 0x27a   : > { %v2698_v34 = vpop.eup %2697 }
 0x27b   : > { %v1307_v35 = vpop.xlane.xlu0 %1306  ;;  %v1308_v36 = vsel %vm1280_vm2, %v2698_v34, 0.0 }
 0x27c   : > { %2699 = vrcp.f32 %v1307_v35  ;;  %1309 = vadd.xlane.f32.xlu1 %v1308_v36  ;;  %v2817_v36 = vmov 128.0  }
 0x27f   : > { %v1289_v37 = vpop.xlane.xlu2 %1288 }
 0x280   : > { %v1295_v43 = vsub.f32 %v1278_v19, %v1289_v37  ;;  %v2565_v19 = vld [vmem:[%s3443_s26 + $0x20] sm:$0xff]  ;;  %v2424_v37 = vld [vmem:[%s3444_s6 + $0x70] sm:$0xf] }
 0x281   : > { %1495 = vmatpush.bf16.msrb.mxu1 %v2565_v19  ;;  %v2376_v19 = vld [vmem:[%s3444_s6 + $0x10] sm:$0xf] }
 0x282   : > { %v2700_v38 = vpop.eup %2699  ;;  %v1301_v45 = vmul.f32 1.442695, %v1295_v43 }
 0x283   : > { %v1321_v39 = vmul.f32 %v2700_v38, %v2696_v14  ;;  %v2584_v38 = vld [vmem:[%s3444_s6 + $0x74] sm:$0xf0] }
 0x285   : > { %v1325_v40 = vpack.c.bf16 %v1321_v39, %v1321_v39  ;;  %1496 = vmatpush.bf16.msrb.mxu1 %v2564_v20  ;;  %v2583_v39 = vld [vmem:[%s3444_s6 + $0x74] sm:$0xf]  ;;  %v2572_v20 = vld [vmem:[%s3444_s6 + $0x14] sm:$0xf0] }
 0x287   : > { %v1292_v41 = vpop.xlane.xlu2 %1291  ;;  %2330 = vmatmul.msk.bf16.vlgmr.msrb.gmra.mxu2 %vm1280_vm2, %v1325_v40  ;;  %v2425_v40 = vor.u32 %v2584_v38, %v2424_v37  ;;  %v2590_v38 = vld [vmem:[%s3447_s14 + $0x28] sm:$0xff] }
 0x288   : > { %v1296_v42 = vsub.f32 %v1279_v23, %v1292_v41  ;;  %v2561_v23 = vld [vmem:[%s3443_s26] sm:$0xff]  ;;  %v2426_v41 = vld [vmem:[%s3444_s6 + $0x78] sm:$0xf0] }
 0x289   : > { %1497 = vmatpush.bf16.msrb.mxu1 %v2563_v21  ;;  %v2571_v21 = vld [vmem:[%s3444_s6 + $0x14] sm:$0xf] }
 0x28a   : > { %v1303_v44 = vmul.f32 1.442695, %v1296_v42  ;;  %v2429_v42 = vor.u32 %v2583_v39, %v2426_v41  ;;  %v2598_v39 = vld [vmem:[%s3447_s14 + $0x68] sm:$0xff]  ;;  %v2597_v41 = vld [vmem:[%s3447_s14 + $0x60] sm:$0xff] }
 0x28c   : > { %2701 = vpow2.f32 %v1303_v44 }
 0x28d   : > { %2703 = vpow2.f32 %v1301_v45  ;;  %1498 = vmatpush.bf16.msrb.mxu1 %v2562_v22  ;;  %v2377_v22 = vor.u32 %v2572_v20, %v2376_v19 }
 0x28e   : > { %v1169_v50 = vpop.permute.xlu0 %1168 }
 0x28f   : > { %v1178_v51 = vpack.c.bf16 %v1169_v50, %v1169_v50 }
 0x291   : > { %v1353_v52 = vsel %vm1332_vm3, %v1178_v51, 0  ;;  %1499 = vmatpush.bf16.msrb.mxu1 %v2561_v23  ;;  %v2378_v23 = vld [vmem:[%s3444_s6 + $0x18] sm:$0xf0] }
 0x292   : > { %v2702_v46 = vpop.eup %2701  ;;  %1362 = vmatpush.bf16.msra.mxu2 %v1353_v52  ;;  %v2416_v52 = vld [vmem:[%s3444_s6 + $0x60] sm:$0xf] }
 0x293   : > { %v1314_v47 = vsel %vm1280_vm2, %v2702_v46, 0.0  ;;  %v2704_v48 = vpop.eup %2703 }
 0x294   : > { %1315 = vadd.xlane.f32.xlu2 %v1314_v47  ;;  %v1311_v49 = vsel %vm1280_vm2, %v2704_v48, 0.0 }
 0x295   : > { %1171 = vrot.lane.b32.xlu1 %v1136_v27, %s2814_s27 }
 0x296   : > { %1646 = vmatpush.bf16.msrb.mxu2 %v2425_v40  ;;  %v2589_v40 = vld [vmem:[%s3447_s14 + $0x20] sm:$0xff] }
 0x29c   : > { %1312 = vadd.xlane.f32.xlu2 %v1311_v49 }
 0x2b4   : > { %1174 = vrot.lane.b32.xlu2 %v1136_v27, %s2813_s24 }
 0x2ef   : > { %v1310_v53 = vpop.xlane.xlu1 %1309 }
 0x2f0   : > { %2705 = vrcp.f32 %v1310_v53  ;;  %v2582_v53 = vld [vmem:[%s3444_s6 + $0x64] sm:$0xf0] }
 0x2f6   : > { %v2706_v54 = vpop.eup %2705 }
 0x2f7   : > { %v1322_v55 = vmul.f32 %v2706_v54, %v2698_v34  ;;  %v2581_v54 = vld [vmem:[%s3444_s6 + $0x64] sm:$0xf] }
 0x2f9   : > { %v1326_v56 = vpack.c.bf16 %v1322_v55, %v1322_v55  ;;  %v2417_v55 = vor.u32 %v2582_v53, %v2416_v52  ;;  %v2690_v53 = vld [vmem:[%s877_s7] ss:$0 sm:$0xff] }
 0x2fb   : > { %2331 = vmatmul.msk.bf16.vlgmr.msra.gmra.mxu2 %vm1280_vm2, %v1326_v56  ;;  %v2418_v56 = vld [vmem:[%s3444_s6 + $0x68] sm:$0xf0] }
 0x2fc   : > { %1647 = vmatpush.bf16.msrb.mxu2 %v2417_v55 }
 0x307   : > { %v1316_v57 = vpop.xlane.xlu2 %1315  ;;  %v1172_v58 = vpop.permute.xlu1 %1171 }
 0x308   : > { %v1179_v59 = vpack.c.bf16 %v1172_v58, %v1172_v58  ;;  %2707 = vrcp.f32 %v1316_v57  ;;  %v2421_v57 = vor.u32 %v2581_v54, %v2418_v56  ;;  %v2408_v58 = vld [vmem:[%s3444_s6 + $0x50] sm:$0xf]  ;;  %v2691_v56 = vld [vmem:[%s880_s25] ss:$0 sm:$0xff] }
 0x30a   : > { %v1372_v60 = vsel %vm1332_vm3, %v1179_v59, 0  ;;  %v1345_v61 = vpop.f32.mrf.mxu2  ;;  %v2580_v59 = vld [vmem:[%s3444_s6 + $0x54] sm:$0xf0] }
 0x30b   : > { %1381 = vmatpush.bf16.msrb.mxu3 %v1372_v60  ;;  %v2579_v60 = vld [vmem:[%s3444_s6 + $0x54] sm:$0xf] }
 0x30e   : > { %v2708_v0 = vpop.eup %2707 }
 0x30f   : > { %v1313_v62 = vpop.xlane.xlu2 %1312  ;;  %v1324_v4 = vmul.f32 %v2708_v0, %v2702_v46  ;;  %1659 = vmatpush.bf16.msra.mxu3 %v2429_v42  ;;  %v2400_v0 = vld [vmem:[%s3444_s6 + $0x40] sm:$0xf] }
 0x310   : > { %2709 = vrcp.f32 %v1313_v62  ;;  %v2410_v62 = vld [vmem:[%s3444_s6 + $0x58] sm:$0xf0] }
 0x311   : > { %v1328_v8 = vpack.c.bf16 %v1324_v4, %v1324_v4  ;;  %2711 = vrcp.f32 %v2817_v36  ;;  %v2402_v4 = vld [vmem:[%s3444_s6 + $0x48] sm:$0xf0]  ;;  %v2599_v36 = vld [vmem:[%s3447_s14 + $0x70] sm:$0xff] }
 0x312   : > { %v1347_v63 = vpop.f32.mrf.mxu2 }
 0x313   : > { %1660 = vmatpush.bf16.msra.mxu3 %v2421_v57  ;;  %v2413_v63 = vor.u32 %v2579_v60, %v2410_v62  ;;  %v2586_v60 = vld [vmem:[%s3447_s14 + $0x8] sm:$0xff]  ;;  %v2585_v62 = vld [vmem:[%s3447_s14] sm:$0xff] }
 0x316   : > { %v2710_v1 = vpop.eup %2709 }
 0x317   : > { %v1323_v2 = vmul.f32 %v2710_v1, %v2704_v48  ;;  %v1175_v3 = vpop.permute.xlu2 %1174  ;;  %v2712_v43 = vpop.eup %2711  ;;  %1661 = vmatpush.bf16.msra.mxu3 %v2413_v63  ;;  %v2578_v1 = vld [vmem:[%s3444_s6 + $0x44] sm:$0xf0]  ;;  %v2593_v63 = vld [vmem:[%s3447_s14 + $0x40] sm:$0xff] }
 0x318   : > { %v1180_v5 = vpack.c.bf16 %v1175_v3, %v1175_v3  ;;  %v1511_v44 = vmul.f32 128.0, %v2712_v43  ;;  %vm1515_vm6 = vweird.f32 %v2712_v43  ;;  %v2401_v3 = vor.u32 %v2578_v1, %v2400_v0 }
 0x319   : > { %v1327_v6 = vpack.c.bf16 %v1323_v2, %v1323_v2  ;;  %v2577_v2 = vld [vmem:[%s3444_s6 + $0x44] sm:$0xf] }
 0x31a   : > { %v1391_v7 = vsel %vm1332_vm3, %v1180_v5, 0  ;;  %v1512_v45 = vsub.f32 1.0, %v1511_v44  ;;  %v2405_v5 = vor.u32 %v2577_v2, %v2402_v4  ;;  %v2588_v44 = vld [vmem:[%s3447_s14 + $0x18] sm:$0xff] }
 0x31b   : > { %2332 = vmatmul.msk.bf16.vlgmr.msrb.gmra.mxu3 %vm1280_vm2, %v1327_v6  ;;  %1400 = vmatpush.bf16.msra.mxu0 %v1391_v7  ;;  %v2392_v6 = vld [vmem:[%s3444_s6 + $0x30] sm:$0xf]  ;;  %v2576_v7 = vld [vmem:[%s3444_s6 + $0x34] sm:$0xf0] }
 0x31c   : > { %1662 = vmatpush.bf16.msra.mxu3 %v2405_v5 }
 0x31e   : > { %2333 = vmatmul.msk.bf16.vlgmr.msra.gmra.mxu0 %vm1280_vm2, %v1328_v8  ;;  %v2575_v8 = vld [vmem:[%s3444_s6 + $0x34] sm:$0xf] }
 0x37e   : > { %v1364_v9 = vpop.f32.mrf.mxu2 }
 0x37f   : > { %1407 = vrot.lane.b32.xlu0 %v1364_v9, %s2813_s24  ;;  %v2393_v9 = vor.u32 %v2576_v7, %v2392_v6 }
 0x386   : > { %v1366_v10 = vpop.f32.mrf.mxu2 }
 0x387   : > { %v2394_v10 = vld [vmem:[%s3444_s6 + $0x38] sm:$0xf0] }
 0x39b   : > { %v1402_v11 = vpop.f32.mrf.mxu0 }
 0x39c   : > { %1415 = vrot.lane.b32.xlu0 %v1402_v11, %s2815_s18  ;;  %v2397_v11 = vor.u32 %v2575_v8, %v2394_v10 }
 0x39e   : > { %v1383_v12 = vpop.f32.mrf.mxu3  ;;  %1663 = vmatpush.bf16.msra.mxu3 %v2397_v11 }
 0x39f   : > { %1411 = vrot.lane.b32.xlu1 %v1383_v12, %s2814_s27  ;;  %v2384_v12 = vld [vmem:[%s3444_s6 + $0x20] sm:$0xf]  ;;  %s3449_s27 = sld [smem:[#allocation22_spill]] }
 0x3a3   : > { %v1404_v13 = vpop.f32.mrf.mxu0 }
 0x3a4   : > { %v2574_v13 = vld [vmem:[%s3444_s6 + $0x24] sm:$0xf0] }
 0x3a5   : > { %v2385_v15 = vor.u32 %v2574_v13, %v2384_v12  ;;  %v2692_v12 = vld [vmem:[%s874_s3] ss:$0 sm:$0xff] }
 0x3a6   : > { %v1385_v14 = vpop.f32.mrf.mxu3 }
 0x3a7   : > { %v2573_v14 = vld [vmem:[%s3444_s6 + $0x24] sm:$0xf] }
 0x3a8   : > { %v2389_v18 = vor.u32 %v2573_v14, %v2386_v16 }
 0x3aa   : > { %1664 = vmatpush.bf16.msra.mxu3 %v2389_v18 }
 0x3f1   : > { %v1408_v24 = vpop.permute.xlu0 %1407 }
 0x3f2   : > { %v1418_v25 = vsel %vm1181_vm0, %v1345_v61, %v1408_v24  ;;  %v2409_v61 = vor.u32 %v2580_v59, %v2408_v58  ;;  %v2381_v24 = vor.u32 %v2571_v21, %v2378_v23 }
 0x3f4   : > { %1648 = vmatpush.bf16.msrb.mxu2 %v2409_v61  ;;  %1665 = vmatpush.bf16.msra.mxu3 %v2381_v24  ;;  %v2594_v61 = vld [vmem:[%s3447_s14 + $0x48] sm:$0xff] }
 0x3f8   : > { %1649 = vmatpush.bf16.msrb.mxu2 %v2401_v3 }
 0x3fc   : > { %1650 = vmatpush.bf16.msrb.mxu2 %v2393_v9 }
 0x400   : > { %1651 = vmatpush.bf16.msrb.mxu2 %v2385_v15 }
 0x404   : > { %1652 = vmatpush.bf16.msrb.mxu2 %v2377_v22 }
 0x40e   : > { %v1416_v27 = vpop.permute.xlu0 %1415 }
 0x411   : > { %v1412_v26 = vpop.permute.xlu1 %1411 }
 0x412   : > { %v1420_v28 = vsel %vm1419_vm4, %v1418_v25, %v1412_v26  ;;  %v2368_v25 = vld [vmem:[%s3444_s6] sm:$0xf]  ;;  %v2570_v26 = vld [vmem:[%s3444_s6 + $0x4] sm:$0xf0] }
 0x413   : > { %v1422_v29 = vsel %vm1421_vm5, %v1420_v28, %v1416_v27  ;;  %v2569_v27 = vld [vmem:[%s3444_s6 + $0x4] sm:$0xf]  ;;  %v2369_v28 = vor.u32 %v2570_v26, %v2368_v25 }
 0x414   : > { %v1423_v30 = vpack.c.bf16 %v1422_v29, %v1422_v29  ;;  %v2370_v29 = vld [vmem:[%s3444_s6 + $0x8] sm:$0xf0] }
 0x415   : > { %1653 = vmatpush.bf16.msrb.mxu2 %v2369_v28 }
 0x416   : > { %1500 = vmatmul.bf16.vlgmr.msrb.gmra.mxu1 %v1423_v30  ;;  %v2373_v30 = vor.u32 %v2569_v27, %v2370_v29 }
 0x418   : > { %1666 = vmatpush.bf16.msra.mxu3 %v2373_v30 }
 0x493   : > { %v1501_v32 = vpop.f32.mrf.mxu1 }
 0x494   : > { %v1502_v33 = vadd.f32 %v2689_v31, %v1501_v32  ;;  %v2592_v31 = vld [vmem:[%s3447_s14 + $0x38] sm:$0xff] }
 0x495   : > { %v2600_v32 = vld [vmem:[%s3447_s14 + $0x78] sm:$0xff]  ;;  %1808 = vmatpush.bf16.msrb.mxu0 %v2592_v31 }
 0x496   : > { %v1505_v34 = vadd.f32 %v1502_v33, %v3100_v17  ;;  %v1513_v17 = vmul.f32 %v2712_v43, %v1512_v45  ;;  %1821 = vmatpush.bf16.msra.mxu1 %v2600_v32  ;;  %v2596_v45 = vld [vmem:[%s3447_s14 + $0x58] sm:$0xff] }
 0x498   : > { %1508 = vadd.xlane.f32.xlu1 %v1505_v34  ;;  %v1514_v46 = vadd.f32 %v2712_v43, %v1513_v17 }
 0x49a   : > { %v3192_v47 = vsel %vm1515_vm6, %v2712_v43, %v1514_v46  ;;  %1822 = vmatpush.bf16.msra.mxu1 %v2599_v36 }
 0x49b   : > { %v1503_v35 = vpop.f32.mrf.mxu1 }
 0x49c   : > { %v2591_v35 = vld [vmem:[%s3447_s14 + $0x30] sm:$0xff] }
 0x49d   : > { %1809 = vmatpush.bf16.msrb.mxu0 %v2591_v35 }
 0x49e   : > { %1823 = vmatpush.bf16.msra.mxu1 %v2598_v39 }
 0x4a1   : > { %1810 = vmatpush.bf16.msrb.mxu0 %v2590_v38 }
 0x4a2   : > { %1824 = vmatpush.bf16.msra.mxu1 %v2597_v41 }
 0x4a5   : > { %1811 = vmatpush.bf16.msrb.mxu0 %v2589_v40 }
 0x4a6   : > { %1825 = vmatpush.bf16.msra.mxu1 %v2596_v45 }
 0x4a9   : > { %1812 = vmatpush.bf16.msrb.mxu0 %v2588_v44 }
 0x50b   : > { %v1509_v48 = vpop.xlane.xlu1 %1508 }
 0x50c   : > { %v1517_v49 = vmul.f32 %v3192_v47, %v1509_v48  ;;  %v2587_v48 = vld [vmem:[%s3447_s14 + $0x10] sm:$0xff] }
 0x50d   : > { %1813 = vmatpush.bf16.msrb.mxu0 %v2587_v48 }
 0x50e   : > { %v3195_v50 = vsub.f32 %v1505_v34, %v1517_v49  ;;  %v2595_v49 = vld [vmem:[%s3447_s14 + $0x50] sm:$0xff] }
 0x50f   : > { %1826 = vmatpush.bf16.msra.mxu1 %v2595_v49 }
 0x510   : > { %v1519_v51 = vmul.f32 %v3195_v50, %v3195_v50 }
 0x511   : > { %1814 = vmatpush.bf16.msrb.mxu0 %v2586_v60 }
 0x512   : > { %1520 = vadd.xlane.f32.xlu0 %v1519_v51 }
 0x513   : > { %1827 = vmatpush.bf16.msra.mxu1 %v2594_v61 }
 0x515   : > { %1815 = vmatpush.bf16.msrb.mxu0 %v2585_v62 }
 0x517   : > { %1828 = vmatpush.bf16.msra.mxu1 %v2593_v63 }
 0x585   : > { %v1521_v33 = vpop.xlane.xlu0 %1520 }
 0x586   : > { %v1522_v34 = vmul.f32 %v1521_v33, %v3192_v47 }
 0x588   : > { %v1523_v37 = vadd.f32 1e-05, %v1522_v34  ;;  %v2693_v34 = vld [vmem:[%s883_s11] ss:$0 sm:$0xff] }
 0x58a   : > { %2713 = vrsqrt.f32 %v1523_v37  ;;  %vm1530_vm8 = vweird.f32 %v1523_v37 }
 0x590   : > { %v2714_v42 = vpop.eup %2713 }
 0x591   : > { %v1525_v43 = vmul.f32 %v2714_v42, %v1523_v37  ;;  %vm1531_vm7 = vweird.f32 %v2714_v42 }
 0x592   : > { %vm1532_vm9 = vmor %vm1530_vm8, %vm1531_vm7 }
 0x593   : > { %v1526_v17 = vmul.f32 %v2714_v42, %v1525_v43 }
 0x595   : > { %v1527_v46 = vmul.f32 0.5, %v1526_v17 }
 0x597   : > { %v1528_v51 = vsub.f32 1.5, %v1527_v46 }
 0x599   : > { %v1529_v52 = vmul.f32 %v2714_v42, %v1528_v51 }
 0x59b   : > { %v1533_v54 = vsel %vm1532_vm9, %v2714_v42, %v1529_v52 }
 0x59c   : > { %v1534_v55 = vmul.f32 %v1533_v54, %v3195_v50  ;;  %v1560_v50 = vld [vmem:[%s3449_s27] sm:$0x3] }
 0x59d   : > { %v1562_v0 = vperm.slane %v1560_v50, 0  ;;  %v1563_v1 = vperm.slane %v1560_v50, 1 }
 0x59e   : > { %v1538_v57 = vmul.f32 %v2690_v53, %v1534_v55 }
 0x5a0   : > { %v1542_v58 = vadd.f32 %v2691_v56, %v1538_v57 }
 0x5a2   : > { %v1543_v59 = vpack.c.bf16 %v1542_v58, %v1542_v58 }
 0x5a4   : > { %1654 = vmatmul.bf16.vlgmr.msrb.gmra.mxu2 %v1543_v59  ;;  %1667 = vmatmul.bf16.vlgmr.msra.gmra.mxu3 %v1543_v59 }
 0x627   : > { %v1655_v2 = vpop.f32.mrf.mxu2  ;;  %v1668_v3 = vpop.f32.mrf.mxu3 }
 0x628   : > { %v1656_v4 = vadd.f32 %v1655_v2, %v1562_v0  ;;  %v1669_v5 = vadd.f32 %v1668_v3, %v1563_v1 }
 0x62a   : > { %v1672_v6 = vmax.f32 %v1656_v4, 0.0  ;;  %v1673_v7 = vmax.f32 %v1669_v5, 0.0 }
 0x62c   : > { %v1674_v8 = vpack.c.bf16 %v1672_v6, %v1672_v6  ;;  %v1675_v9 = vpack.c.bf16 %v1673_v7, %v1673_v7 }
 0x62e   : > { %1816 = vmatmul.bf16.vlgmr.msrb.gmra.mxu0 %v1674_v8  ;;  %1829 = vmatmul.bf16.vlgmr.msra.gmra.mxu1 %v1675_v9 }
 0x62f   : > { %v1657_v10 = vpop.f32.mrf.mxu2  ;;  %v1670_v11 = vpop.f32.mrf.mxu3 }
 0x6ab   : > { %v1817_v13 = vpop.f32.mrf.mxu0  ;;  %v1830_v14 = vpop.f32.mrf.mxu1 }
 0x6ac   : > { %v1818_v15 = vadd.f32 %v2692_v12, %v1817_v13 }
 0x6ae   : > { %v1831_v16 = vadd.f32 %v1830_v14, %v1818_v15 }
 0x6b0   : > { %v1834_v18 = vadd.f32 %v1831_v16, %v1542_v58 }
 0x6b2   : > { %1837 = vadd.xlane.f32.xlu2 %v1834_v18 }
 0x6b3   : > { %v1819_v19 = vpop.f32.mrf.mxu0  ;;  %v1832_v20 = vpop.f32.mrf.mxu1 }
 0x725   : > { %v1838_v21 = vpop.xlane.xlu2 %1837 }
 0x726   : > { %v1839_v22 = vmul.f32 %v1838_v21, %v3192_v47 }
 0x728   : > { %v1840_v23 = vsub.f32 %v1834_v18, %v1839_v22 }
 0x72a   : > { %v1841_v24 = vmul.f32 %v1840_v23, %v1840_v23 }
 0x72c   : > { %1842 = vadd.xlane.f32.xlu1 %v1841_v24 }
 0x79f   : > { %v1843_v25 = vpop.xlane.xlu1 %1842 }
 0x7a0   : > { %v1844_v26 = vmul.f32 %v1843_v25, %v3192_v47  ;;  %v2694_v47 = vld [vmem:[%s886_s15] ss:$0 sm:$0xff] }
 0x7a2   : > { %v1845_v27 = vadd.f32 1e-05, %v1844_v26 }
 0x7a4   : > { %2715 = vrsqrt.f32 %v1845_v27  ;;  %vm1852_vm11 = vweird.f32 %v1845_v27 }
 0x7aa   : > { %v2716_v28 = vpop.eup %2715 }
 0x7ab   : > { %v1847_v29 = vmul.f32 %v2716_v28, %v1845_v27  ;;  %vm1853_vm10 = vweird.f32 %v2716_v28 }
 0x7ac   : > { %vm1854_vm12 = vmor %vm1852_vm11, %vm1853_vm10 }
 0x7ad   : > { %v1848_v30 = vmul.f32 %v2716_v28, %v1847_v29 }
 0x7af   : > { %v1849_v31 = vmul.f32 0.5, %v1848_v30 }
 0x7b1   : > { %v1850_v32 = vsub.f32 1.5, %v1849_v31 }
 0x7b3   : > { %v1851_v33 = vmul.f32 %v2716_v28, %v1850_v32 }
 0x7b5   : > { %v1855_v35 = vsel %vm1854_vm12, %v2716_v28, %v1851_v33 }
 0x7b6   : > { %v1856_v36 = vmul.f32 %v1855_v35, %v1840_v23 }
 0x7b8   : > { %v1860_v37 = vmul.f32 %v2693_v34, %v1856_v36  ;;  %1869 = sbr.rel (%p2494_p1) target bundleno = 2147 (0x863), region = 104 }
 0x7ba   : > { %v1864_v38 = vadd.f32 %v2694_v47, %v1860_v37 }
 0x7bc   : > { %1865 = vst [vmem:[#allocation2] sm:$0xff] %v1864_v38 }
 0x7bd   : > { %v2608_v39 = vld [vmem:[%s3454_s17 + $0x38] sm:$0xff]  ;;  %v2607_v40 = vld [vmem:[%s3454_s17 + $0x30] sm:$0xff]  ;;  %v2606_v41 = vld [vmem:[%s3454_s17 + $0x28] sm:$0xff]  ;;  %v1870_v46 = vpack.c.bf16 %v1864_v38, %v1864_v38 }
 0x7be   : > { %1935 = vmatpush.bf16.msra.mxu0 %v2608_v39  ;;  %v2605_v42 = vld [vmem:[%s3454_s17 + $0x20] sm:$0xff]  ;;  %v2604_v43 = vld [vmem:[%s3454_s17 + $0x18] sm:$0xff]  ;;  %v2603_v44 = vld [vmem:[%s3454_s17 + $0x10] sm:$0xff] }
 0x7bf   : > { %v2602_v45 = vld [vmem:[%s3454_s17 + $0x8] sm:$0xff]  ;;  %v2601_v17 = vld [vmem:[%s3454_s17] sm:$0xff] }
 0x7c2   : > { %1936 = vmatpush.bf16.msra.mxu0 %v2607_v40 }
 0x7c6   : > { %1937 = vmatpush.bf16.msra.mxu0 %v2606_v41 }
 0x7ca   : > { %1938 = vmatpush.bf16.msra.mxu0 %v2605_v42 }
 0x7ce   : > { %1939 = vmatpush.bf16.msra.mxu0 %v2604_v43 }
 0x7d2   : > { %1940 = vmatpush.bf16.msra.mxu0 %v2603_v44 }
 0x7d6   : > { %1941 = vmatpush.bf16.msra.mxu0 %v2602_v45 }
 0x7da   : > { %1942 = vmatpush.bf16.msra.mxu0 %v2601_v17 }
 0x7dd   : > { %1943 = vmatmul.bf16.vlgmr.msra.gmra.mxu0 %v1870_v46 }
 0x85a   : > { %v1944_v48 = vpop.f32.mrf.mxu0 }
 0x85b   : > { %1948 = vst [vmem:[%s818_s12] sm:$0xff] %v1944_v48 }
 0x862   : > { %v1946_v49 = vpop.f32.mrf.mxu0 }
 0x863 PF: > { %s3455_s7 = sld [smem:[#allocation10_spill]]  ;;  %s1962_s1 = sshll.u32 %s818_s12, 4  ;;  %s1963_s1 = int_to_ptr.vmem [resolvable:$true] %s1962_s1 }
 0x864   : > { %s3456_s25 = sld [smem:[#allocation7_spill]] }
 0x865   : > { %s3458_s0 = sld [smem:[#allocation39_spill]] }
 0x869   : > { %s2528_s20 = sshll.u32 %s3455_s7, 3 }
 0x86a   : > { %s3460_s11 = sand.u32 1, %s3456_s25  }
 0x86b   : > { %s3459_s26 = smov %s3458_s0  ;;  %s1960_s23 = scalar_lea.hbm %s3458_s0, %s2528_s20 }
 0x86c   : > { %s1964_s6 = sshll.u32 %s1960_s23, 4  ;;  %s1950_s10 = scalar_lea.sflag [#allocation4], %s3460_s11  ;;  %s1965_s6 = int_to_ptr.hbm [resolvable:$true] %s1964_s6 }
 0x86d   : > { %s2731_s19 = sshra.s32 %s1965_s6, 4  ;;  %s2737_s14 = scalar_lea.hbm %s3459_s26, 16  ;;  %s2732_s19 = int_to_ptr.hbm [resolvable:$true] %s2731_s19 }
 0x86e   : > { %s2733_s29 = scalar_lea.hbm %s2732_s19, 8  ;;  %p2738_p6 = scmp.lt.s32.totalorder %s2732_s19, %s3459_s26 }
 0x86f   : > { %p2734_p2 = scmp.ne.s32.totalorder %s2732_s19, %s2733_s29  ;;  %p2739_p7 = scmp.lt.s32.totalorder %s2737_s14, %s2733_s29 }
 0x871   : > { %p2735_p4 = pnand %p2734_p2, %p2967_p3  ;;  %p2740_p8 = por %p2739_p7, %p2738_p6 }
 0x873   : > { %p2736_p5 = pneg %p2735_p4 }
 0x875   : > { %p2741_p10 = pnand %p2740_p8, %p2736_p5 }
 0x877   : > { %2744 = shalt.err (!%p2741_p10)
}
 0x878   : > { %2609 = dma.vmem_to_hbm [thread:$0]  (%p2967_p3), %s1963_s1, 128, %s1965_s6, %s1950_s10  }
 0x879 PF: > { %s3461_s12 = sld [smem:[#allocation13_spill]] }
 0x87a   : > { %s3462_s22 = sld [smem:[#allocation6_spill]] }
 0x87f   : > { %p2615_p11 = scmp.ge.s32.totalorder %s3461_s12, 2 }
 0x880   : > { %s1976_s27 = sand.u32 1, %s3462_s22  }
 0x881   : > { %p2612_p12 = pnand %p2615_p11, %p2977_p9  ;;  %s1977_s18 = scalar_lea.sflag [#allocation4], %s1976_s27 }
 0x883   : > { %p2613_p13 = pneg %p2612_p12 }
 0x885   : > { %2778 = dma.done.wait (%p2613_p13), %s1977_s18, 128  }
 0x886   : > { %2780 = vsyncadd (%p2613_p13), %s1977_s18, 4294967168  ;;  %s32_s23 = sadd.s32 1, %s3461_s12   ;;  %s3464_s0 = sld [smem:[#allocation7_spill]] }
 0x887   : > { %p29_p0 = scmp.ge.s32.totalorder %s32_s23, 6   ;;  %s3465_s30 = sld [smem:[#allocation8_spill]] }
 0x888   : > { %s3466_s20 = sld [smem:[#allocation18_spill]] }
 0x889   : > { %s3467_s21 = sld [smem:[#allocation11_spill]]  ;;  %31 = sbr.rel (!%p29_p0) target bundleno = 23 (0x17), region = 190 }
 0x88a   : > { %s3468_s1 = sld [smem:[#allocation12_spill]] }
 0x88b   : > { %s3469_s22 = sld [smem:[#allocation14_spill]] }
 0x88c   : > { %s3470_s2 = sld [smem:[#allocation16_spill]] }
 0x88e   :  { %1983 = vsyncpa [#allocation4], 1 }
 0x88f   :  { %1985 = vsyncpa [#allocation4 + $0x1], 1 }

</bundles_post_ra>
